<compile_context>
chip_gen: v6e
topology: v6e:2x2x1
jax: 0.10.0
libtpu: 0.0.40
codegen_flags: <defaults>
</compile_context>

<pallas_src>
import functools

import numpy as np

import jax
import jax.numpy as jnp
from jax.experimental import pallas as pl
from jax.experimental.pallas import tpu as pltpu  # noqa: F401  (TPU backend)

# ---- hyper-parameters (small, consistent with the module's __init__) ----
B, S, J, D = 2, 8, 4, 16          # batch, seq_len, n_joints, d_model (dim)
N_HEADS, D_HEAD = 2, 6            # n_heads, d_head
MLP_DIM = 32                      # mlp_dim
DH = N_HEADS * D_HEAD             # 12  (n_heads * d_head)
JD = J * D                        # 64
JDH = J * DH                      # 48
DHS = DH * S                      # 96
SEG = 2 * J                       # 8 D-wide segments per fused row
PAIR_W = 2 * J * D                # 128 lanes per fused ("seq-pair") row
EPS = 1e-5
NEG = -1e30                       # additive mask value (exp underflows to 0)


def _full_spec(shape):
    # whole-array VMEM block (no grid)
    return pl.BlockSpec(shape, lambda *_: (0,) * len(shape))


def _layernorm(h, g, b):
    mu = jnp.mean(h, axis=-1, keepdims=True)
    var = jnp.mean((h - mu) ** 2, axis=-1, keepdims=True)
    return (h - mu) / jnp.sqrt(var + EPS) * g + b


# --------------------------- fused Pallas kernel ---------------------------

def _fused_transformer_kernel(
    xf_ref, xq_ref, xr_ref, mt_ref, ms_ref,
    wqkv_t_ref, wbt_e_ref, wbt_o_ref, g_t_ref, b_t_ref,
    wqk_s_ref, wv_s_ref, rsel0_ref, rsel1_ref, kmask_ref,
    wbs_e_ref, wbs_o_ref, g_s_ref, b_s_ref,
    pe_ref, po_ref,
    w1_ref, b1_ref, w2_ref, b2_ref, g_m_ref, b_m_ref,
    aseg_ref,
    o_ref, *, scale):
  f32 = jnp.float32
  dn_t = (((1,), (1,)), ((), ()))     # contract dim-1 with dim-1  (A @ B.T on the MXU)

  xf = xf_ref[...]                    # (B*S, J*D)   = (16, 64)  rows (b, s)
  xq = xq_ref[...]                    # (B*S/2, 128) = (8, 128)  rows (b, s//2), lane-dense
  aseg = aseg_ref[...]                # (128, 128) block-diag averaging matrix
  pe = pe_ref[...]                    # (8, 16) row selectors: even / odd seq positions
  po = po_ref[...]

  def recip(v):
    r = pl.reciprocal(v, approx=True)       # EUP slot (free), then one Newton step
    return r * (2.0 - v * r)                # -> ~f32-accurate reciprocal

  def softmax(s):                           # rows always contain >=1 unmasked entry
    m = jnp.max(s, axis=-1, keepdims=True)
    p = jnp.exp(s - m)
    return p * recip(jnp.sum(p, axis=-1, keepdims=True))

  def seg_layernorm(h, g, b):               # LayerNorm over each 16-lane segment
    mu = jnp.dot(h, aseg, preferred_element_type=f32)
    c = h - mu
    var = jnp.dot(c * c, aseg, preferred_element_type=f32)
    return c * jax.lax.rsqrt(var + EPS) * g + b

  def gelu_erf(v):
    # exact-erf GELU; erf via Abramowitz–Stegun 7.1.26 (|err| < 1.5e-7) using exp/div
    # only, so we do not rely on a lax.erf lowering inside Mosaic.
    z = v * 0.7071067811865476
    az = jnp.abs(z)
    t = 1.0 / (1.0 + 0.3275911 * az)
    poly = ((((1.061405429 * t - 1.453152027) * t + 1.421413741) * t
             - 0.284496736) * t + 0.254829592) * t
    e = 1.0 - poly * jnp.exp(-az * az)
    erf = jnp.where(z >= 0, e, -e)
    return 0.5 * v * (1.0 + erf)

  # ---------------- temporal attention branch (PostNorm) ----------------
  qkv = jnp.dot(xf, wqkv_t_ref[...], preferred_element_type=f32)   # (16, 384) fused QKV
  q_t = qkv[:, 0:JDH]                      # slices land on 128-lane boundaries
  k_t = qkv[:, 128:128 + JDH]
  v_t = qkv[:, 256:256 + JDH]
  s_t = jax.lax.dot_general(q_t, k_t, dn_t, preferred_element_type=f32) * scale + mt_ref[...]
  a_t = softmax(s_t)                                               # (16, 16)
  at = jnp.dot(a_t, v_t, preferred_element_type=f32)               # (16, 48) rows (b, s)
  at_e = jnp.dot(pe, at, preferred_element_type=f32)               # (8, 48) even s
  at_o = jnp.dot(po, at, preferred_element_type=f32)               # (8, 48) odd  s
  t_out = (jnp.dot(at_e, wbt_e_ref[...], preferred_element_type=f32)
           + jnp.dot(at_o, wbt_o_ref[...], preferred_element_type=f32))   # (8, 128)
  t_ln = seg_layernorm(t_out + xq, g_t_ref[...], b_t_ref[...])

  # ---------------- spatial attention branch (PostNorm) ----------------
  qk = jnp.dot(xq, wqk_s_ref[...], preferred_element_type=f32)     # (8, 224) fused Q|K
  q_s = qk[:, 0:DHS]                                               # (8, 96)
  k_s = qk[:, 128:128 + DHS]
  s_s = jax.lax.dot_general(q_s, k_s, dn_t, preferred_element_type=f32) * scale + ms_ref[...]
  a_s = softmax(s_s)                                               # (8, 8), block-diag per batch
  vr = jnp.dot(xr_ref[...], wv_s_ref[...], preferred_element_type=f32)   # (16, 48) values, pre-permuted layout
  kmask = kmask_ref[...]
  rselb = (rsel0_ref[...], rsel1_ref[...])
  pp_parts = []
  for b in range(B):
    # T_b = kron(attn_b^T, I_12) built with constant selectors (2 tiny MXU matmuls);
    # applying it on the right reproduces the .view/.permute scramble exactly.
    tmp = jax.lax.dot_general(rselb[b], a_s, dn_t, preferred_element_type=f32)      # (48, 8)
    t_kron = jax.lax.dot_general(tmp, rselb[b], dn_t, preferred_element_type=f32) * kmask
    pp_parts.append(jnp.dot(vr[b * S:(b + 1) * S, :], t_kron, preferred_element_type=f32))
  pp = jnp.concatenate(pp_parts, axis=0)                           # (16, 48) rows (b, s)
  pp_e = jnp.dot(pe, pp, preferred_element_type=f32)
  pp_o = jnp.dot(po, pp, preferred_element_type=f32)
  s_out = (jnp.dot(pp_e, wbs_e_ref[...], preferred_element_type=f32)
           + jnp.dot(pp_o, wbs_o_ref[...], preferred_element_type=f32))  # (8, 128)
  s_ln = seg_layernorm(s_out + xq, g_s_ref[...], b_s_ref[...])

  # ---------------- MLP branch (PostNorm) ----------------
  y = t_ln + s_ln                                                  # (8, 128)
  h1 = jnp.dot(y, w1_ref[...], preferred_element_type=f32) + b1_ref[...]   # (8, 256) lane-dense
  h2 = jnp.dot(gelu_erf(h1), w2_ref[...], preferred_element_type=f32) + b2_ref[...]
  o_ref[...] = seg_layernorm(h2 + y, g_m_ref[...], b_m_ref[...])   # (8, 128) unmasked store


# --------------------------- wrapper ---------------------------

def make_fused_params(p):
  """One-time preprocessing: block-diagonal / padded weights and constant selectors."""
  f32 = jnp.float32
  eye = lambda n: jnp.eye(n, dtype=f32)
  left = jnp.array([[1.0, 0.0]], f32)
  right = jnp.array([[0.0, 1.0]], f32)
  tile8 = lambda v: jnp.tile(v, (1, SEG))

  blk_bt = jnp.kron(eye(J), p["wb_t"])            # (48, 64)
  blk_bs = jnp.kron(eye(J), p["wb_s"])            # (48, 64)
  zqkv = jnp.zeros((JD, 128 - JDH), f32)          # pad so in-kernel splits are 128-aligned
  zq = jnp.zeros((PAIR_W, 128 - DHS), f32)

  # masks / permutation constants (numpy -> folded as constants)
  r = np.arange(B * S)
  mask_t = np.where((r[:, None] // S == r[None, :] // S)
                    & (r[None, :] % S <= r[:, None] % S), 0.0, NEG).astype(np.float32)
  rs = np.arange(B * J)
  mask_s = np.where(rs[:, None] // J == rs[None, :] // J, 0.0, NEG).astype(np.float32)
  rsel_base = np.kron(np.eye(J), np.ones((DH, 1))).astype(np.float32)       # (48, 4)
  rsel0 = np.concatenate([rsel_base, np.zeros((JDH, J), np.float32)], axis=1)  # (48, 8)
  rsel1 = np.concatenate([np.zeros((JDH, J), np.float32), rsel_base], axis=1)
  kmask = np.kron(np.ones((J, J)), np.eye(DH)).astype(np.float32)           # (48, 48)
  pe = np.kron(np.eye(B), np.eye(S)[0::2]).astype(np.float32)               # (8, 16)
  po = np.kron(np.eye(B), np.eye(S)[1::2]).astype(np.float32)
  aseg = np.kron(np.eye(SEG), np.ones((D, D)) / D).astype(np.float32)       # (128, 128)

  return dict(
      mask_t=jnp.asarray(mask_t), mask_s=jnp.asarray(mask_s),
      # temporal: fused (and padded) QKV, split back-projection for even/odd seq slots
      wqkv_t=jnp.concatenate([p["wq_t"], zqkv, p["wk_t"], zqkv, p["wv_t"], zqkv], axis=1),
      wbt_e=jnp.kron(left, blk_bt), wbt_o=jnp.kron(right, blk_bt),
      g_t=tile8(p["g_t"]), b_t=tile8(p["b_t"]),
      # spatial
      wqk_s=jnp.concatenate([jnp.kron(eye(2), p["wq_s"]), zq,
                             jnp.kron(eye(SEG), p["wk_s"])], axis=1),        # (128, 224)
      wv_s=jnp.kron(eye(J), p["wv_s"]),                                      # (64, 48)
      rsel0=jnp.asarray(rsel0), rsel1=jnp.asarray(rsel1), kmask=jnp.asarray(kmask),
      wbs_e=jnp.kron(left, blk_bs), wbs_o=jnp.kron(right, blk_bs),
      g_s=tile8(p["g_s"]), b_s=tile8(p["b_s"]),
      pe=jnp.asarray(pe), po=jnp.asarray(po),
      # MLP (block-diagonal over the 8 D-segments of a fused row)
      w1=jnp.kron(eye(SEG), p["w1"]), b1=tile8(p["b1"]),
      w2=jnp.kron(eye(SEG), p["w2"]), b2=tile8(p["b2"]),
      g_m=tile8(p["g_m"]), b_m=tile8(p["b_m"]),
      aseg=jnp.asarray(aseg),
  )


@jax.jit
def transformer_forward(x, fp):
  # wrapper-side *views* of x (layout plumbing only; all compute is in the kernel)
  xf = x.reshape(B * S, JD)                                   # rows (b, s)
  xq = x.reshape(B * S // 2, PAIR_W)                          # rows (b, s//2), 128 lanes
  xr = (x.reshape(B, S // 2, 2, J, D)                         # value matrix for the
          .transpose(0, 2, 3, 1, 4)                           # spatial-branch scramble
          .reshape(B * 2 * J, (S // 2) * D))                  # rows (b, s_out)

  args = (xf, xq, xr, fp["mask_t"], fp["mask_s"],
          fp["wqkv_t"], fp["wbt_e"], fp["wbt_o"], fp["g_t"], fp["b_t"],
          fp["wqk_s"], fp["wv_s"], fp["rsel0"], fp["rsel1"], fp["kmask"],
          fp["wbs_e"], fp["wbs_o"], fp["g_s"], fp["b_s"],
          fp["pe"], fp["po"],
          fp["w1"], fp["b1"], fp["w2"], fp["b2"], fp["g_m"], fp["b_m"],
          fp["aseg"])

  out_pair = pl.pallas_call(
      functools.partial(_fused_transformer_kernel, scale=float(D) ** -0.5),
      out_shape=jax.ShapeDtypeStruct((B * S // 2, PAIR_W), jnp.float32),
      in_specs=[_full_spec(a.shape) for a in args],
      out_specs=_full_spec((B * S // 2, PAIR_W)),
  )(*args)
  # TODO(synk): on v7x a grid=(B,) "parallel" split over the two TensorCores could be
  # measured, but the kernel is tiny so single-core execution is kept here.
  return out_pair.reshape(B, S, J, D)


# --------------------------- pure-JAX reference ---------------------------

def ref_forward(x, p):
  hp = jax.lax.Precision.HIGHEST
  mm = lambda a, b: jnp.matmul(a, b, precision=hp)
  scale = float(D) ** -0.5
  xf = x.reshape(B, S, JD)

  # temporal MHA + PostNorm
  q = mm(xf, p["wq_t"]); k = mm(xf, p["wk_t"]); v = mm(xf, p["wv_t"])
  s = mm(q, jnp.swapaxes(k, 1, 2)) * scale
  mask = jnp.where(jnp.triu(jnp.ones((S, S), bool), 1), -jnp.inf, 0.0)
  a = jax.nn.softmax(s + mask, axis=-1)
  at = mm(a, v)
  t_out = mm(at.reshape(B, S, J, DH), p["wb_t"])
  t = _layernorm(t_out + x, p["g_t"], p["b_t"])

  # spatial MHA + PostNorm
  qs = mm(xf, p["wq_s"]).reshape(B, J, DHS)
  ks = mm(x, p["wk_s"]).reshape(B, J, DHS)
  vs = mm(x, p["wv_s"]).reshape(B, J, DHS)
  ss = mm(qs, jnp.swapaxes(ks, 1, 2)) * scale
  a_s = jax.nn.softmax(ss, axis=-1)
  mha = mm(a_s, vs)
  sp = mm(mha.reshape(B, J, S, DH).transpose(0, 2, 1, 3), p["wb_s"])
  sblk = _layernorm(sp + x, p["g_s"], p["b_s"])

  # MLP + PostNorm
  y = t + sblk
  h = jax.nn.gelu(mm(y, p["w1"]) + p["b1"], approximate=False)
  h = mm(h, p["w2"]) + p["b2"]
  return _layernorm(h + y, p["g_m"], p["b_m"])


# --------------------------- params ---------------------------

def init_params(key):
  ks = jax.random.split(key, 18)

  def w(k, shape):
    return (jax.random.normal(k, shape, jnp.float32) /
            jnp.sqrt(jnp.float32(shape[0])))

  def small(k, shape):
    return 0.1 * jax.random.normal(k, shape, jnp.float32)

  return {
      # temporal attention (Linear weights stored as (in, out))
      "wq_t": w(ks[0], (JD, JDH)), "wk_t": w(ks[1], (JD, JDH)), "wv_t": w(ks[2], (JD, JDH)),
      "wb_t": w(ks[3], (DH, D)),
      "g_t": 1.0 + small(ks[4], (1, D)), "b_t": small(ks[5], (1, D)),
      # spatial attention
      "wq_s": w(ks[6], (JD, JDH)), "wk_s": w(ks[7], (D, DH)), "wv_s": w(ks[8], (D, DH)),
      "wb_s": w(ks[9], (DH, D)),
      "g_s": 1.0 + small(ks[10], (1, D)), "b_s": small(ks[11], (1, D)),
      # MLP
      "w1": w(ks[12], (D, MLP_DIM)), "b1": small(ks[13], (1, MLP_DIM)),
      "w2": w(ks[14], (MLP_DIM, D)), "b2": small(ks[15], (1, D)),
      "g_m": 1.0 + small(ks[16], (1, D)), "b_m": small(ks[17], (1, D)),
  }


if __name__ == "__main__":
  key = jax.random.PRNGKey(0)
  kx, kp = jax.random.split(key)
  x = jax.random.normal(kx, (B, S, J, D), jnp.float32)
  params = init_params(kp)
  fused = make_fused_params(params)     # one-time weight preprocessing

  out = jax.block_until_ready(transformer_forward(x, fused))
  assert out.shape == (B, S, J, D)

  ref = ref_forward(x, params)
  err = float(jnp.max(jnp.abs(out - ref)))
  if not bool(jnp.isfinite(out).all()) or err > 1e-2:
    raise AssertionError(f"mismatch vs reference: max abs err = {err}")

  print("KERNEL_OK")
</pallas_src>

<mosaic_0001>
module attributes {stable_mosaic.version = 11 : i64} {
  func.func @_fused_transformer_kernel(%arg0: memref<16x64xf32, #tpu.memory_space<vmem>>, %arg1: memref<8x128xf32, #tpu.memory_space<vmem>>, %arg2: memref<16x64xf32, #tpu.memory_space<vmem>>, %arg3: memref<16x16xf32, #tpu.memory_space<vmem>>, %arg4: memref<8x8xf32, #tpu.memory_space<vmem>>, %arg5: memref<64x384xf32, #tpu.memory_space<vmem>>, %arg6: memref<48x128xf32, #tpu.memory_space<vmem>>, %arg7: memref<48x128xf32, #tpu.memory_space<vmem>>, %arg8: memref<1x128xf32, #tpu.memory_space<vmem>>, %arg9: memref<1x128xf32, #tpu.memory_space<vmem>>, %arg10: memref<128x224xf32, #tpu.memory_space<vmem>>, %arg11: memref<64x48xf32, #tpu.memory_space<vmem>>, %arg12: memref<48x8xf32, #tpu.memory_space<vmem>>, %arg13: memref<48x8xf32, #tpu.memory_space<vmem>>, %arg14: memref<48x48xf32, #tpu.memory_space<vmem>>, %arg15: memref<48x128xf32, #tpu.memory_space<vmem>>, %arg16: memref<48x128xf32, #tpu.memory_space<vmem>>, %arg17: memref<1x128xf32, #tpu.memory_space<vmem>>, %arg18: memref<1x128xf32, #tpu.memory_space<vmem>>, %arg19: memref<8x16xf32, #tpu.memory_space<vmem>>, %arg20: memref<8x16xf32, #tpu.memory_space<vmem>>, %arg21: memref<128x256xf32, #tpu.memory_space<vmem>>, %arg22: memref<1x256xf32, #tpu.memory_space<vmem>>, %arg23: memref<256x128xf32, #tpu.memory_space<vmem>>, %arg24: memref<1x128xf32, #tpu.memory_space<vmem>>, %arg25: memref<1x128xf32, #tpu.memory_space<vmem>>, %arg26: memref<1x128xf32, #tpu.memory_space<vmem>>, %arg27: memref<128x128xf32, #tpu.memory_space<vmem>>, %arg28: memref<8x128xf32, #tpu.memory_space<vmem>>) attributes {dimension_semantics = [], scalar_prefetch = 0 : i64, scratch_operands = 0 : i64, tpu.core_type = #tpu.core_type<tc>} {
    %c0 = arith.constant 0 : index
    %c0_0 = arith.constant 0 : index
    %0 = vector.load %arg0[%c0, %c0_0] : memref<16x64xf32, #tpu.memory_space<vmem>>, vector<16x64xf32>
    %c0_1 = arith.constant 0 : index
    %c0_2 = arith.constant 0 : index
    %1 = vector.load %arg1[%c0_1, %c0_2] : memref<8x128xf32, #tpu.memory_space<vmem>>, vector<8x128xf32>
    %c0_3 = arith.constant 0 : index
    %c0_4 = arith.constant 0 : index
    %2 = vector.load %arg27[%c0_3, %c0_4] : memref<128x128xf32, #tpu.memory_space<vmem>>, vector<128x128xf32>
    %c0_5 = arith.constant 0 : index
    %c0_6 = arith.constant 0 : index
    %3 = vector.load %arg19[%c0_5, %c0_6] : memref<8x16xf32, #tpu.memory_space<vmem>>, vector<8x16xf32>
    %c0_7 = arith.constant 0 : index
    %c0_8 = arith.constant 0 : index
    %4 = vector.load %arg20[%c0_7, %c0_8] : memref<8x16xf32, #tpu.memory_space<vmem>>, vector<8x16xf32>
    %c0_9 = arith.constant 0 : index
    %c0_10 = arith.constant 0 : index
    %5 = vector.load %arg5[%c0_9, %c0_10] : memref<64x384xf32, #tpu.memory_space<vmem>>, vector<64x384xf32>
    %cst = arith.constant dense<0.000000e+00> : vector<16x384xf32>
    %6 = tpu.matmul %0, %5, %cst {dimension_numbers = #tpu.dot_dimension_numbers<[1], [0], [0], [1], [0, 0, 1, 1], [], []>} : vector<16x64xf32>, vector<64x384xf32>, vector<16x384xf32> -> vector<16x384xf32>
    %7 = vector.extract_strided_slice %6 {offsets = [0, 0], sizes = [16, 48], strides = [1, 1]} : vector<16x384xf32> to vector<16x48xf32>
    %8 = vector.extract_strided_slice %6 {offsets = [0, 128], sizes = [16, 48], strides = [1, 1]} : vector<16x384xf32> to vector<16x48xf32>
    %9 = vector.extract_strided_slice %6 {offsets = [0, 256], sizes = [16, 48], strides = [1, 1]} : vector<16x384xf32> to vector<16x48xf32>
    %cst_11 = arith.constant dense<0.000000e+00> : vector<16x16xf32>
    %10 = tpu.matmul %7, %8, %cst_11 {dimension_numbers = #tpu.dot_dimension_numbers<[1], [1], [0], [0], [0, 0, 1, 0], [], []>} : vector<16x48xf32>, vector<16x48xf32>, vector<16x16xf32> -> vector<16x16xf32>
    %cst_12 = arith.constant 2.500000e-01 : f32
    %11 = vector.broadcast %cst_12 : f32 to vector<16x16xf32>
    %12 = arith.mulf %10, %11 : vector<16x16xf32>
    %c0_13 = arith.constant 0 : index
    %c0_14 = arith.constant 0 : index
    %13 = vector.load %arg3[%c0_13, %c0_14] : memref<16x16xf32, #tpu.memory_space<vmem>>, vector<16x16xf32>
    %14 = arith.addf %12, %13 : vector<16x16xf32>
    %cst_15 = arith.constant dense<0xFF800000> : vector<16xf32>
    %15 = vector.multi_reduction <maximumf>, %14, %cst_15 [1] : vector<16x16xf32> to vector<16xf32>
    %16 = vector.shape_cast %15 : vector<16xf32> to vector<16x1xf32>
    %17 = vector.broadcast %16 : vector<16x1xf32> to vector<16x16xf32>
    %18 = arith.subf %14, %17 : vector<16x16xf32>
    %19 = math.exp %18 : vector<16x16xf32>
    %cst_16 = arith.constant dense<0.000000e+00> : vector<16xf32>
    %20 = vector.multi_reduction <add>, %19, %cst_16 [1] : vector<16x16xf32> to vector<16xf32>
    %21 = vector.shape_cast %20 : vector<16xf32> to vector<16x1xf32>
    %22 = tpu.reciprocal %21 {approx = true} : vector<16x1xf32> -> vector<16x1xf32>
    %23 = arith.mulf %21, %22 : vector<16x1xf32>
    %cst_17 = arith.constant 2.000000e+00 : f32
    %24 = vector.broadcast %cst_17 : f32 to vector<16x1xf32>
    %25 = arith.subf %24, %23 : vector<16x1xf32>
    %26 = arith.mulf %22, %25 : vector<16x1xf32>
    %27 = vector.broadcast %26 : vector<16x1xf32> to vector<16x16xf32>
    %28 = arith.mulf %19, %27 : vector<16x16xf32>
    %cst_18 = arith.constant dense<0.000000e+00> : vector<16x48xf32>
    %29 = tpu.matmul %28, %9, %cst_18 {dimension_numbers = #tpu.dot_dimension_numbers<[1], [0], [0], [1], [0, 0, 1, 1], [], []>} : vector<16x16xf32>, vector<16x48xf32>, vector<16x48xf32> -> vector<16x48xf32>
    %cst_19 = arith.constant dense<0.000000e+00> : vector<8x48xf32>
    %30 = tpu.matmul %3, %29, %cst_19 {dimension_numbers = #tpu.dot_dimension_numbers<[1], [0], [0], [1], [0, 0, 1, 1], [], []>} : vector<8x16xf32>, vector<16x48xf32>, vector<8x48xf32> -> vector<8x48xf32>
    %cst_20 = arith.constant dense<0.000000e+00> : vector<8x48xf32>
    %31 = tpu.matmul %4, %29, %cst_20 {dimension_numbers = #tpu.dot_dimension_numbers<[1], [0], [0], [1], [0, 0, 1, 1], [], []>} : vector<8x16xf32>, vector<16x48xf32>, vector<8x48xf32> -> vector<8x48xf32>
    %c0_21 = arith.constant 0 : index
    %c0_22 = arith.constant 0 : index
    %32 = vector.load %arg6[%c0_21, %c0_22] : memref<48x128xf32, #tpu.memory_space<vmem>>, vector<48x128xf32>
    %cst_23 = arith.constant dense<0.000000e+00> : vector<8x128xf32>
    %33 = tpu.matmul %30, %32, %cst_23 {dimension_numbers = #tpu.dot_dimension_numbers<[1], [0], [0], [1], [0, 0, 1, 1], [], []>} : vector<8x48xf32>, vector<48x128xf32>, vector<8x128xf32> -> vector<8x128xf32>
    %c0_24 = arith.constant 0 : index
    %c0_25 = arith.constant 0 : index
    %34 = vector.load %arg7[%c0_24, %c0_25] : memref<48x128xf32, #tpu.memory_space<vmem>>, vector<48x128xf32>
    %cst_26 = arith.constant dense<0.000000e+00> : vector<8x128xf32>
    %35 = tpu.matmul %31, %34, %cst_26 {dimension_numbers = #tpu.dot_dimension_numbers<[1], [0], [0], [1], [0, 0, 1, 1], [], []>} : vector<8x48xf32>, vector<48x128xf32>, vector<8x128xf32> -> vector<8x128xf32>
    %36 = arith.addf %33, %35 : vector<8x128xf32>
    %37 = arith.addf %36, %1 : vector<8x128xf32>
    %c0_27 = arith.constant 0 : index
    %c0_28 = arith.constant 0 : index
    %38 = vector.load %arg8[%c0_27, %c0_28] : memref<1x128xf32, #tpu.memory_space<vmem>>, vector<1x128xf32>
    %c0_29 = arith.constant 0 : index
    %c0_30 = arith.constant 0 : index
    %39 = vector.load %arg9[%c0_29, %c0_30] : memref<1x128xf32, #tpu.memory_space<vmem>>, vector<1x128xf32>
    %cst_31 = arith.constant dense<0.000000e+00> : vector<8x128xf32>
    %40 = tpu.matmul %37, %2, %cst_31 {dimension_numbers = #tpu.dot_dimension_numbers<[1], [0], [0], [1], [0, 0, 1, 1], [], []>} : vector<8x128xf32>, vector<128x128xf32>, vector<8x128xf32> -> vector<8x128xf32>
    %41 = arith.subf %37, %40 : vector<8x128xf32>
    %42 = arith.mulf %41, %41 : vector<8x128xf32>
    %cst_32 = arith.constant dense<0.000000e+00> : vector<8x128xf32>
    %43 = tpu.matmul %42, %2, %cst_32 {dimension_numbers = #tpu.dot_dimension_numbers<[1], [0], [0], [1], [0, 0, 1, 1], [], []>} : vector<8x128xf32>, vector<128x128xf32>, vector<8x128xf32> -> vector<8x128xf32>
    %cst_33 = arith.constant 9.99999974E-6 : f32
    %44 = vector.broadcast %cst_33 : f32 to vector<8x128xf32>
    %45 = arith.addf %43, %44 : vector<8x128xf32>
    %46 = math.rsqrt %45 : vector<8x128xf32>
    %47 = arith.mulf %41, %46 : vector<8x128xf32>
    %48 = vector.broadcast %38 : vector<1x128xf32> to vector<8x128xf32>
    %49 = arith.mulf %47, %48 : vector<8x128xf32>
    %50 = vector.broadcast %39 : vector<1x128xf32> to vector<8x128xf32>
    %51 = arith.addf %49, %50 : vector<8x128xf32>
    %c0_34 = arith.constant 0 : index
    %c0_35 = arith.constant 0 : index
    %52 = vector.load %arg10[%c0_34, %c0_35] : memref<128x224xf32, #tpu.memory_space<vmem>>, vector<128x224xf32>
    %cst_36 = arith.constant dense<0.000000e+00> : vector<8x224xf32>
    %53 = tpu.matmul %1, %52, %cst_36 {dimension_numbers = #tpu.dot_dimension_numbers<[1], [0], [0], [1], [0, 0, 1, 1], [], []>} : vector<8x128xf32>, vector<128x224xf32>, vector<8x224xf32> -> vector<8x224xf32>
    %54 = vector.extract_strided_slice %53 {offsets = [0, 0], sizes = [8, 96], strides = [1, 1]} : vector<8x224xf32> to vector<8x96xf32>
    %55 = vector.extract_strided_slice %53 {offsets = [0, 128], sizes = [8, 96], strides = [1, 1]} : vector<8x224xf32> to vector<8x96xf32>
    %cst_37 = arith.constant dense<0.000000e+00> : vector<8x8xf32>
    %56 = tpu.matmul %54, %55, %cst_37 {dimension_numbers = #tpu.dot_dimension_numbers<[1], [1], [0], [0], [0, 0, 1, 0], [], []>} : vector<8x96xf32>, vector<8x96xf32>, vector<8x8xf32> -> vector<8x8xf32>
    %cst_38 = arith.constant 2.500000e-01 : f32
    %57 = vector.broadcast %cst_38 : f32 to vector<8x8xf32>
    %58 = arith.mulf %56, %57 : vector<8x8xf32>
    %c0_39 = arith.constant 0 : index
    %c0_40 = arith.constant 0 : index
    %59 = vector.load %arg4[%c0_39, %c0_40] : memref<8x8xf32, #tpu.memory_space<vmem>>, vector<8x8xf32>
    %60 = arith.addf %58, %59 : vector<8x8xf32>
    %cst_41 = arith.constant dense<0xFF800000> : vector<8xf32>
    %61 = vector.multi_reduction <maximumf>, %60, %cst_41 [1] : vector<8x8xf32> to vector<8xf32>
    %62 = vector.shape_cast %61 : vector<8xf32> to vector<8x1xf32>
    %63 = vector.broadcast %62 : vector<8x1xf32> to vector<8x8xf32>
    %64 = arith.subf %60, %63 : vector<8x8xf32>
    %65 = math.exp %64 : vector<8x8xf32>
    %cst_42 = arith.constant dense<0.000000e+00> : vector<8xf32>
    %66 = vector.multi_reduction <add>, %65, %cst_42 [1] : vector<8x8xf32> to vector<8xf32>
    %67 = vector.shape_cast %66 : vector<8xf32> to vector<8x1xf32>
    %68 = tpu.reciprocal %67 {approx = true} : vector<8x1xf32> -> vector<8x1xf32>
    %69 = arith.mulf %67, %68 : vector<8x1xf32>
    %cst_43 = arith.constant 2.000000e+00 : f32
    %70 = vector.broadcast %cst_43 : f32 to vector<8x1xf32>
    %71 = arith.subf %70, %69 : vector<8x1xf32>
    %72 = arith.mulf %68, %71 : vector<8x1xf32>
    %73 = vector.broadcast %72 : vector<8x1xf32> to vector<8x8xf32>
    %74 = arith.mulf %65, %73 : vector<8x8xf32>
    %c0_44 = arith.constant 0 : index
    %c0_45 = arith.constant 0 : index
    %75 = vector.load %arg2[%c0_44, %c0_45] : memref<16x64xf32, #tpu.memory_space<vmem>>, vector<16x64xf32>
    %c0_46 = arith.constant 0 : index
    %c0_47 = arith.constant 0 : index
    %76 = vector.load %arg11[%c0_46, %c0_47] : memref<64x48xf32, #tpu.memory_space<vmem>>, vector<64x48xf32>
    %cst_48 = arith.constant dense<0.000000e+00> : vector<16x48xf32>
    %77 = tpu.matmul %75, %76, %cst_48 {dimension_numbers = #tpu.dot_dimension_numbers<[1], [0], [0], [1], [0, 0, 1, 1], [], []>} : vector<16x64xf32>, vector<64x48xf32>, vector<16x48xf32> -> vector<16x48xf32>
    %c0_49 = arith.constant 0 : index
    %c0_50 = arith.constant 0 : index
    %78 = vector.load %arg14[%c0_49, %c0_50] : memref<48x48xf32, #tpu.memory_space<vmem>>, vector<48x48xf32>
    %c0_51 = arith.constant 0 : index
    %c0_52 = arith.constant 0 : index
    %79 = vector.load %arg12[%c0_51, %c0_52] : memref<48x8xf32, #tpu.memory_space<vmem>>, vector<48x8xf32>
    %c0_53 = arith.constant 0 : index
    %c0_54 = arith.constant 0 : index
    %80 = vector.load %arg13[%c0_53, %c0_54] : memref<48x8xf32, #tpu.memory_space<vmem>>, vector<48x8xf32>
    %cst_55 = arith.constant dense<0.000000e+00> : vector<48x8xf32>
    %81 = tpu.matmul %79, %74, %cst_55 {dimension_numbers = #tpu.dot_dimension_numbers<[1], [1], [0], [0], [0, 0, 1, 0], [], []>} : vector<48x8xf32>, vector<8x8xf32>, vector<48x8xf32> -> vector<48x8xf32>
    %cst_56 = arith.constant dense<0.000000e+00> : vector<48x48xf32>
    %82 = tpu.matmul %81, %79, %cst_56 {dimension_numbers = #tpu.dot_dimension_numbers<[1], [1], [0], [0], [0, 0, 1, 0], [], []>} : vector<48x8xf32>, vector<48x8xf32>, vector<48x48xf32> -> vector<48x48xf32>
    %83 = arith.mulf %82, %78 : vector<48x48xf32>
    %84 = vector.extract_strided_slice %77 {offsets = [0, 0], sizes = [8, 48], strides = [1, 1]} : vector<16x48xf32> to vector<8x48xf32>
    %cst_57 = arith.constant dense<0.000000e+00> : vector<8x48xf32>
    %85 = tpu.matmul %84, %83, %cst_57 {dimension_numbers = #tpu.dot_dimension_numbers<[1], [0], [0], [1], [0, 0, 1, 1], [], []>} : vector<8x48xf32>, vector<48x48xf32>, vector<8x48xf32> -> vector<8x48xf32>
    %cst_58 = arith.constant dense<0.000000e+00> : vector<48x8xf32>
    %86 = tpu.matmul %80, %74, %cst_58 {dimension_numbers = #tpu.dot_dimension_numbers<[1], [1], [0], [0], [0, 0, 1, 0], [], []>} : vector<48x8xf32>, vector<8x8xf32>, vector<48x8xf32> -> vector<48x8xf32>
    %cst_59 = arith.constant dense<0.000000e+00> : vector<48x48xf32>
    %87 = tpu.matmul %86, %80, %cst_59 {dimension_numbers = #tpu.dot_dimension_numbers<[1], [1], [0], [0], [0, 0, 1, 0], [], []>} : vector<48x8xf32>, vector<48x8xf32>, vector<48x48xf32> -> vector<48x48xf32>
    %88 = arith.mulf %87, %78 : vector<48x48xf32>
    %89 = vector.extract_strided_slice %77 {offsets = [8, 0], sizes = [8, 48], strides = [1, 1]} : vector<16x48xf32> to vector<8x48xf32>
    %cst_60 = arith.constant dense<0.000000e+00> : vector<8x48xf32>
    %90 = tpu.matmul %89, %88, %cst_60 {dimension_numbers = #tpu.dot_dimension_numbers<[1], [0], [0], [1], [0, 0, 1, 1], [], []>} : vector<8x48xf32>, vector<48x48xf32>, vector<8x48xf32> -> vector<8x48xf32>
    %91 = tpu.concatenate %85, %90 in 0 : vector<8x48xf32>, vector<8x48xf32> -> vector<16x48xf32>
    %cst_61 = arith.constant dense<0.000000e+00> : vector<8x48xf32>
    %92 = tpu.matmul %3, %91, %cst_61 {dimension_numbers = #tpu.dot_dimension_numbers<[1], [0], [0], [1], [0, 0, 1, 1], [], []>} : vector<8x16xf32>, vector<16x48xf32>, vector<8x48xf32> -> vector<8x48xf32>
    %cst_62 = arith.constant dense<0.000000e+00> : vector<8x48xf32>
    %93 = tpu.matmul %4, %91, %cst_62 {dimension_numbers = #tpu.dot_dimension_numbers<[1], [0], [0], [1], [0, 0, 1, 1], [], []>} : vector<8x16xf32>, vector<16x48xf32>, vector<8x48xf32> -> vector<8x48xf32>
    %c0_63 = arith.constant 0 : index
    %c0_64 = arith.constant 0 : index
    %94 = vector.load %arg15[%c0_63, %c0_64] : memref<48x128xf32, #tpu.memory_space<vmem>>, vector<48x128xf32>
    %cst_65 = arith.constant dense<0.000000e+00> : vector<8x128xf32>
    %95 = tpu.matmul %92, %94, %cst_65 {dimension_numbers = #tpu.dot_dimension_numbers<[1], [0], [0], [1], [0, 0, 1, 1], [], []>} : vector<8x48xf32>, vector<48x128xf32>, vector<8x128xf32> -> vector<8x128xf32>
    %c0_66 = arith.constant 0 : index
    %c0_67 = arith.constant 0 : index
    %96 = vector.load %arg16[%c0_66, %c0_67] : memref<48x128xf32, #tpu.memory_space<vmem>>, vector<48x128xf32>
    %cst_68 = arith.constant dense<0.000000e+00> : vector<8x128xf32>
    %97 = tpu.matmul %93, %96, %cst_68 {dimension_numbers = #tpu.dot_dimension_numbers<[1], [0], [0], [1], [0, 0, 1, 1], [], []>} : vector<8x48xf32>, vector<48x128xf32>, vector<8x128xf32> -> vector<8x128xf32>
    %98 = arith.addf %95, %97 : vector<8x128xf32>
    %99 = arith.addf %98, %1 : vector<8x128xf32>
    %c0_69 = arith.constant 0 : index
    %c0_70 = arith.constant 0 : index
    %100 = vector.load %arg17[%c0_69, %c0_70] : memref<1x128xf32, #tpu.memory_space<vmem>>, vector<1x128xf32>
    %c0_71 = arith.constant 0 : index
    %c0_72 = arith.constant 0 : index
    %101 = vector.load %arg18[%c0_71, %c0_72] : memref<1x128xf32, #tpu.memory_space<vmem>>, vector<1x128xf32>
    %cst_73 = arith.constant dense<0.000000e+00> : vector<8x128xf32>
    %102 = tpu.matmul %99, %2, %cst_73 {dimension_numbers = #tpu.dot_dimension_numbers<[1], [0], [0], [1], [0, 0, 1, 1], [], []>} : vector<8x128xf32>, vector<128x128xf32>, vector<8x128xf32> -> vector<8x128xf32>
    %103 = arith.subf %99, %102 : vector<8x128xf32>
    %104 = arith.mulf %103, %103 : vector<8x128xf32>
    %cst_74 = arith.constant dense<0.000000e+00> : vector<8x128xf32>
    %105 = tpu.matmul %104, %2, %cst_74 {dimension_numbers = #tpu.dot_dimension_numbers<[1], [0], [0], [1], [0, 0, 1, 1], [], []>} : vector<8x128xf32>, vector<128x128xf32>, vector<8x128xf32> -> vector<8x128xf32>
    %cst_75 = arith.constant 9.99999974E-6 : f32
    %106 = vector.broadcast %cst_75 : f32 to vector<8x128xf32>
    %107 = arith.addf %105, %106 : vector<8x128xf32>
    %108 = math.rsqrt %107 : vector<8x128xf32>
    %109 = arith.mulf %103, %108 : vector<8x128xf32>
    %110 = vector.broadcast %100 : vector<1x128xf32> to vector<8x128xf32>
    %111 = arith.mulf %109, %110 : vector<8x128xf32>
    %112 = vector.broadcast %101 : vector<1x128xf32> to vector<8x128xf32>
    %113 = arith.addf %111, %112 : vector<8x128xf32>
    %114 = arith.addf %51, %113 : vector<8x128xf32>
    %c0_76 = arith.constant 0 : index
    %c0_77 = arith.constant 0 : index
    %115 = vector.load %arg21[%c0_76, %c0_77] : memref<128x256xf32, #tpu.memory_space<vmem>>, vector<128x256xf32>
    %cst_78 = arith.constant dense<0.000000e+00> : vector<8x256xf32>
    %116 = tpu.matmul %114, %115, %cst_78 {dimension_numbers = #tpu.dot_dimension_numbers<[1], [0], [0], [1], [0, 0, 1, 1], [], []>} : vector<8x128xf32>, vector<128x256xf32>, vector<8x256xf32> -> vector<8x256xf32>
    %c0_79 = arith.constant 0 : index
    %c0_80 = arith.constant 0 : index
    %117 = vector.load %arg22[%c0_79, %c0_80] : memref<1x256xf32, #tpu.memory_space<vmem>>, vector<1x256xf32>
    %118 = vector.broadcast %117 : vector<1x256xf32> to vector<8x256xf32>
    %119 = arith.addf %116, %118 : vector<8x256xf32>
    %cst_81 = arith.constant 0.707106769 : f32
    %120 = vector.broadcast %cst_81 : f32 to vector<8x256xf32>
    %121 = arith.mulf %119, %120 : vector<8x256xf32>
    %122 = math.absf %121 : vector<8x256xf32>
    %cst_82 = arith.constant 0.327591091 : f32
    %123 = vector.broadcast %cst_82 : f32 to vector<8x256xf32>
    %124 = arith.mulf %123, %122 : vector<8x256xf32>
    %cst_83 = arith.constant 1.000000e+00 : f32
    %125 = vector.broadcast %cst_83 : f32 to vector<8x256xf32>
    %126 = arith.addf %125, %124 : vector<8x256xf32>
    %cst_84 = arith.constant 1.000000e+00 : f32
    %127 = vector.broadcast %cst_84 : f32 to vector<8x256xf32>
    %128 = arith.divf %127, %126 : vector<8x256xf32>
    %cst_85 = arith.constant 1.06140542 : f32
    %129 = vector.broadcast %cst_85 : f32 to vector<8x256xf32>
    %130 = arith.mulf %129, %128 : vector<8x256xf32>
    %cst_86 = arith.constant 1.45315206 : f32
    %131 = vector.broadcast %cst_86 : f32 to vector<8x256xf32>
    %132 = arith.subf %130, %131 : vector<8x256xf32>
    %133 = arith.mulf %132, %128 : vector<8x256xf32>
    %cst_87 = arith.constant 1.42141378 : f32
    %134 = vector.broadcast %cst_87 : f32 to vector<8x256xf32>
    %135 = arith.addf %133, %134 : vector<8x256xf32>
    %136 = arith.mulf %135, %128 : vector<8x256xf32>
    %cst_88 = arith.constant 0.284496725 : f32
    %137 = vector.broadcast %cst_88 : f32 to vector<8x256xf32>
    %138 = arith.subf %136, %137 : vector<8x256xf32>
    %139 = arith.mulf %138, %128 : vector<8x256xf32>
    %cst_89 = arith.constant 0.254829586 : f32
    %140 = vector.broadcast %cst_89 : f32 to vector<8x256xf32>
    %141 = arith.addf %139, %140 : vector<8x256xf32>
    %142 = arith.mulf %141, %128 : vector<8x256xf32>
    %cst_90 = arith.constant 0.000000e+00 : f32
    %143 = vector.broadcast %cst_90 : f32 to vector<8x256xf32>
    %144 = arith.subf %143, %122 : vector<8x256xf32>
    %145 = arith.mulf %144, %122 : vector<8x256xf32>
    %146 = math.exp %145 : vector<8x256xf32>
    %147 = arith.mulf %142, %146 : vector<8x256xf32>
    %cst_91 = arith.constant 1.000000e+00 : f32
    %148 = vector.broadcast %cst_91 : f32 to vector<8x256xf32>
    %149 = arith.subf %148, %147 : vector<8x256xf32>
    %cst_92 = arith.constant 0.000000e+00 : f32
    %150 = vector.broadcast %cst_92 : f32 to vector<8x256xf32>
    %151 = arith.cmpf oge, %121, %150 : vector<8x256xf32>
    %cst_93 = arith.constant 0.000000e+00 : f32
    %152 = vector.broadcast %cst_93 : f32 to vector<8x256xf32>
    %153 = arith.subf %152, %149 : vector<8x256xf32>
    %154 = arith.select %151, %149, %153 : vector<8x256xi1>, vector<8x256xf32>
    %cst_94 = arith.constant 5.000000e-01 : f32
    %155 = vector.broadcast %cst_94 : f32 to vector<8x256xf32>
    %156 = arith.mulf %155, %119 : vector<8x256xf32>
    %cst_95 = arith.constant 1.000000e+00 : f32
    %157 = vector.broadcast %cst_95 : f32 to vector<8x256xf32>
    %158 = arith.addf %157, %154 : vector<8x256xf32>
    %159 = arith.mulf %156, %158 : vector<8x256xf32>
    %c0_96 = arith.constant 0 : index
    %c0_97 = arith.constant 0 : index
    %160 = vector.load %arg23[%c0_96, %c0_97] : memref<256x128xf32, #tpu.memory_space<vmem>>, vector<256x128xf32>
    %cst_98 = arith.constant dense<0.000000e+00> : vector<8x128xf32>
    %161 = tpu.matmul %159, %160, %cst_98 {dimension_numbers = #tpu.dot_dimension_numbers<[1], [0], [0], [1], [0, 0, 1, 1], [], []>} : vector<8x256xf32>, vector<256x128xf32>, vector<8x128xf32> -> vector<8x128xf32>
    %c0_99 = arith.constant 0 : index
    %c0_100 = arith.constant 0 : index
    %162 = vector.load %arg24[%c0_99, %c0_100] : memref<1x128xf32, #tpu.memory_space<vmem>>, vector<1x128xf32>
    %163 = vector.broadcast %162 : vector<1x128xf32> to vector<8x128xf32>
    %164 = arith.addf %161, %163 : vector<8x128xf32>
    %165 = arith.addf %164, %114 : vector<8x128xf32>
    %c0_101 = arith.constant 0 : index
    %c0_102 = arith.constant 0 : index
    %166 = vector.load %arg25[%c0_101, %c0_102] : memref<1x128xf32, #tpu.memory_space<vmem>>, vector<1x128xf32>
    %c0_103 = arith.constant 0 : index
    %c0_104 = arith.constant 0 : index
    %167 = vector.load %arg26[%c0_103, %c0_104] : memref<1x128xf32, #tpu.memory_space<vmem>>, vector<1x128xf32>
    %cst_105 = arith.constant dense<0.000000e+00> : vector<8x128xf32>
    %168 = tpu.matmul %165, %2, %cst_105 {dimension_numbers = #tpu.dot_dimension_numbers<[1], [0], [0], [1], [0, 0, 1, 1], [], []>} : vector<8x128xf32>, vector<128x128xf32>, vector<8x128xf32> -> vector<8x128xf32>
    %169 = arith.subf %165, %168 : vector<8x128xf32>
    %170 = arith.mulf %169, %169 : vector<8x128xf32>
    %cst_106 = arith.constant dense<0.000000e+00> : vector<8x128xf32>
    %171 = tpu.matmul %170, %2, %cst_106 {dimension_numbers = #tpu.dot_dimension_numbers<[1], [0], [0], [1], [0, 0, 1, 1], [], []>} : vector<8x128xf32>, vector<128x128xf32>, vector<8x128xf32> -> vector<8x128xf32>
    %cst_107 = arith.constant 9.99999974E-6 : f32
    %172 = vector.broadcast %cst_107 : f32 to vector<8x128xf32>
    %173 = arith.addf %171, %172 : vector<8x128xf32>
    %174 = math.rsqrt %173 : vector<8x128xf32>
    %175 = arith.mulf %169, %174 : vector<8x128xf32>
    %176 = vector.broadcast %166 : vector<1x128xf32> to vector<8x128xf32>
    %177 = arith.mulf %175, %176 : vector<8x128xf32>
    %178 = vector.broadcast %167 : vector<1x128xf32> to vector<8x128xf32>
    %179 = arith.addf %177, %178 : vector<8x128xf32>
    %c0_108 = arith.constant 0 : index
    %c0_109 = arith.constant 0 : index
    %180 = vector.load %arg28[%c0_108, %c0_109] : memref<8x128xf32, #tpu.memory_space<vmem>>, vector<8x128xf32>
    tpu.vector_store %arg28[%c0_108, %c0_109], %179 {strides = array<i32>} : memref<8x128xf32, #tpu.memory_space<vmem>>, vector<8x128xf32>,
    return
  }
}

</mosaic_0001>

<bundles_post_ra>
// kernel: transformer_forward.1
= control target key start
LH: loop header
LB: loop body
LE: loop exit
PB: predicated region body
PF: predicated region fallthrough
CT: control target
= control target key end

     0   :  { %s5116_s0 = inlined_call_operand.vmem [shape: f32[16,64], index: 0, kind: input, shape index: {}]   ;;  %s5117_s1 = inlined_call_operand.vmem [shape: f32[8,128], index: 1, kind: input, shape index: {}]   ;;  %s5118_s2 = inlined_call_operand.vmem [shape: f32[16,64], index: 2, kind: input, shape index: {}]   ;;  %s5119_s3 = inlined_call_operand.vmem [shape: f32[16,16], index: 3, kind: input, shape index: {}]   ;;  %s5120_s4 = inlined_call_operand.hbm [shape: f32[8,8], index: 4, kind: input, shape index: {}]   ;;  %s5121_s5 = inlined_call_operand.vmem [shape: f32[64,384], index: 5, kind: input, shape index: {}]   ;;  %s5122_s6 = inlined_call_operand.vmem [shape: f32[48,128], index: 6, kind: input, shape index: {}]   ;;  %s5123_s7 = inlined_call_operand.vmem [shape: f32[48,128], index: 7, kind: input, shape index: {}]   ;;  %s5124_s8 = inlined_call_operand.vmem [shape: f32[1,128], index: 8, kind: input, shape index: {}]   ;;  %s5125_s9 = inlined_call_operand.vmem [shape: f32[1,128], index: 9, kind: input, shape index: {}]   ;;  %s5126_s10 = inlined_call_operand.vmem [shape: f32[128,224], index: 10, kind: input, shape index: {}]   ;;  %s5127_s11 = inlined_call_operand.vmem [shape: f32[64,48], index: 11, kind: input, shape index: {}]   ;;  %s5128_s12 = inlined_call_operand.vmem [shape: f32[48,8], index: 12, kind: input, shape index: {}]   ;;  %s5129_s13 = inlined_call_operand.vmem [shape: f32[48,8], index: 13, kind: input, shape index: {}]   ;;  %s5130_s14 = inlined_call_operand.hbm [shape: f32[48,48], index: 14, kind: input, shape index: {}]   ;;  %s5131_s15 = inlined_call_operand.hbm [shape: f32[48,128], index: 15, kind: input, shape index: {}]   ;;  %s5132_s16 = inlined_call_operand.hbm [shape: f32[48,128], index: 16, kind: input, shape index: {}]   ;;  %s5133_s17 = inlined_call_operand.vmem [shape: f32[1,128], index: 17, kind: input, shape index: {}]   ;;  %s5134_s18 = inlined_call_operand.vmem [shape: f32[1,128], index: 18, kind: input, shape index: {}]   ;;  %s5135_s19 = inlined_call_operand.hbm [shape: f32[8,16], index: 19, kind: input, shape index: {}]   ;;  %s5136_s20 = inlined_call_operand.hbm [shape: f32[8,16], index: 20, kind: input, shape index: {}]   ;;  %s5137_s21 = inlined_call_operand.vmem [shape: f32[128,256], index: 21, kind: input, shape index: {}]   ;;  %s5138_s22 = inlined_call_operand.vmem [shape: f32[1,256], index: 22, kind: input, shape index: {}]   ;;  %s5139_s23 = inlined_call_operand.vmem [shape: f32[256,128], index: 23, kind: input, shape index: {}]   ;;  %s5140_s24 = inlined_call_operand.vmem [shape: f32[1,128], index: 24, kind: input, shape index: {}]   ;;  %s5141_s25 = inlined_call_operand.hbm [shape: f32[1,128], index: 25, kind: input, shape index: {}]   ;;  %s5142_s26 = inlined_call_operand.hbm [shape: f32[1,128], index: 26, kind: input, shape index: {}]   ;;  %s5143_s27 = inlined_call_operand.hbm [shape: f32[128,128], index: 27, kind: input, shape index: {}]   ;;  %s5144_s28 = inlined_call_operand.vmem [shape: f32[8,128], index: 28, kind: output, shape index: {}]  }
   0x1   :  { %5154 = sst [smem:[#allocation21_spill]] %s5116_s0 }
   0x2   :  { %5155 = sst [smem:[#allocation22_spill]] %s5117_s1 }
   0x3   :  { %5156 = sst [smem:[#allocation23_spill]] %s5118_s2 }
   0x4   :  { %5157 = sst [smem:[#allocation24_spill]] %s5119_s3 }
   0x5   :  { %5158 = sst [smem:[#allocation25_spill]] %s5120_s4 }
   0x6   :  { %5159 = sst [smem:[#allocation26_spill]] %s5121_s5 }
   0x7   :  { %5160 = sst [smem:[#allocation27_spill]] %s5122_s6 }
   0x8   :  { %5161 = sst [smem:[#allocation28_spill]] %s5123_s7 }
   0x9   :  { %5162 = sst [smem:[#allocation29_spill]] %s5124_s8 }
   0xa   :  { %5163 = sst [smem:[#allocation30_spill]] %s5125_s9 }
   0xb   :  { %5164 = sst [smem:[#allocation31_spill]] %s5126_s10 }
   0xc   :  { %5165 = sst [smem:[#allocation32_spill]] %s5127_s11 }
   0xd   :  { %5166 = sst [smem:[#allocation33_spill]] %s5128_s12 }
   0xe   :  { %33 = vsyncpa [#allocation3], 0 }
   0xf   :  { %34 = vsyncpa [#allocation5], 0 }
  0x10   :  { %35 = vsyncpa [#allocation8], 0 }
  0x11   :  { %36 = vsyncpa [#allocation11], 0 }
  0x12   :  { %37 = vsyncpa [#allocation14], 0  ;;  %s3929_s8 = smov [#allocation4]  }
  0x13   :  { %s79_s5 = sshll.u32 %s3929_s8, 4  ;;  %s80_s5 = int_to_ptr.vmem [resolvable:$true] %s79_s5 }
  0x14   :  { %s3747_s9 = scalar_lea.vmem %s80_s5, 768  ;;  %p3752_p1 = scmp.lt.s32.totalorder %s80_s5, %s80_s5 }
  0x15   :  { %p3748_p0 = scmp.ne.s32.totalorder %s80_s5, %s3747_s9  ;;  %p3753_p2 = scmp.lt.s32.totalorder %s3747_s9, %s3747_s9 }
  0x17   :  { %p3754_p3 = por %p3753_p2, %p3752_p1 }
  0x19   :  { %p3755_p4 = pnand %p3754_p3, %p3748_p0 }
  0x1b   :  { %3758 = shalt.err (!%p3755_p4)
}
  0x1c   :  { %s3930_s30 = smov 128   ;;  %s3931_s3 = smov 8  }
  0x1d   :  { %85 = dma.hbm_to_vmem [thread:$0]  %s5130_s14, 768, %s80_s5, [#allocation5], %s3930_s30, %s3930_s30, %s3931_s3  }
  0x1e   :  { %s3932_s0 = smov [#allocation7]   ;;  %s3933_s29 = smov [#allocation10]  }
  0x1f   :  { %s103_s11 = sshll.u32 %s3932_s0, 4  ;;  %s130_s2 = sshll.u32 %s3933_s29, 4  ;;  %s104_s11 = int_to_ptr.vmem [resolvable:$true] %s103_s11  ;;  %s131_s2 = int_to_ptr.vmem [resolvable:$true] %s130_s2 }
  0x20   :  { %s3767_s7 = scalar_lea.vmem %s104_s11, 768  ;;  %p3772_p6 = scmp.lt.s32.totalorder %s104_s11, %s104_s11 }
  0x21   :  { %p3768_p5 = scmp.ne.s32.totalorder %s104_s11, %s3767_s7  ;;  %p3773_p7 = scmp.lt.s32.totalorder %s3767_s7, %s3767_s7 }
  0x23   :  { %p3774_p8 = por %p3773_p7, %p3772_p6 }
  0x25   :  { %p3775_p9 = pnand %p3774_p8, %p3768_p5 }
  0x27   :  { %3778 = shalt.err (!%p3775_p9)
}
  0x28   :  { %109 = dma.hbm_to_vmem [thread:$0]  %s5132_s16, 768, %s104_s11, [#allocation8], %s3930_s30, %s3930_s30, %s3931_s3  }
  0x29   :  { %s3787_s14 = scalar_lea.vmem %s131_s2, 128  ;;  %p3792_p11 = scmp.lt.s32.totalorder %s131_s2, %s131_s2 }
  0x2a   :  { %p3788_p10 = scmp.ne.s32.totalorder %s131_s2, %s3787_s14  ;;  %p3793_p12 = scmp.lt.s32.totalorder %s3787_s14, %s3787_s14 }
  0x2c   :  { %p3794_p13 = por %p3793_p12, %p3792_p11 }
  0x2e   :  { %p3795_p0 = pnand %p3794_p13, %p3788_p10 }
  0x30   :  { %3798 = shalt.err (!%p3795_p0)
}
  0x31   :  { %133 = dma.hbm_to_vmem [thread:$0]  %s5136_s20, 128, %s131_s2, [#allocation11]  }
  0x32   :  { %s3934_s5 = smov [#allocation13]   ;;  %s3935_s6 = smov [#allocation2]  }
  0x33   :  { %s158_s9 = sshll.u32 %s3934_s5, 4  ;;  %s52_s10 = sshll.u32 %s3935_s6, 4  ;;  %s159_s9 = int_to_ptr.vmem [resolvable:$true] %s158_s9  ;;  %s53_s10 = int_to_ptr.vmem [resolvable:$true] %s52_s10 }
  0x34   :  { %s3807_s0 = scalar_lea.vmem %s159_s9, 16  ;;  %s3811_s16 = scalar_lea.vmem %s159_s9, 32 }
  0x35   :  { %p3808_p1 = scmp.ne.s32.totalorder %s159_s9, %s3807_s0  ;;  %p3812_p2 = scmp.lt.s32.totalorder %s159_s9, %s159_s9 }
  0x36   :  { %p3813_p3 = scmp.lt.s32.totalorder %s3811_s16, %s3807_s0 }
  0x38   :  { %p3814_p4 = por %p3813_p3, %p3812_p2 }
  0x3a   :  { %p3815_p5 = pnand %p3814_p4, %p3808_p1 }
  0x3c   :  { %3818 = shalt.err (!%p3815_p5)
}
  0x3d   :  { %161 = dma.hbm_to_vmem [thread:$0]  %s5142_s26, 16, %s159_s9, [#allocation14]  }
  0x3e   :  { %s3827_s7 = scalar_lea.vmem %s53_s10, 128  ;;  %p3832_p7 = scmp.lt.s32.totalorder %s53_s10, %s53_s10 }
  0x3f   :  { %p3828_p6 = scmp.ne.s32.totalorder %s53_s10, %s3827_s7  ;;  %p3833_p8 = scmp.lt.s32.totalorder %s3827_s7, %s3827_s7 }
  0x41   :  { %p3834_p9 = por %p3833_p8, %p3832_p7 }
  0x43   :  { %p3835_p10 = pnand %p3834_p9, %p3828_p6 }
  0x45   :  { %3838 = shalt.err (!%p3835_p10)
}
  0x46   :  { %s5167_s12 = sld [smem:[#allocation25_spill]]  ;;  %s3936_s1 = smov [#allocation6]  }
  0x47   :  { %s91_s14 = sshll.u32 %s3936_s1, 4  ;;  %s3937_s4 = smov [#allocation9]   ;;  %s92_s14 = int_to_ptr.vmem [resolvable:$true] %s91_s14 }
  0x48   :  { %s120_s8 = sshll.u32 %s3937_s4, 4  ;;  %s3847_s5 = scalar_lea.vmem %s92_s14, 768  ;;  %s121_s8 = int_to_ptr.vmem [resolvable:$true] %s120_s8 }
  0x49   :  { %p3848_p11 = scmp.ne.s32.totalorder %s92_s14, %s3847_s5  ;;  %p3852_p12 = scmp.lt.s32.totalorder %s92_s14, %s92_s14 }
  0x4a   :  { %p3853_p13 = scmp.lt.s32.totalorder %s3847_s5, %s3847_s5 }
  0x4c   :  { %55 = dma.hbm_to_vmem [thread:$0]  %s5167_s12, 128, %s53_s10, [#allocation3]  }
  0x4d   :  { %p3854_p0 = por %p3853_p13, %p3852_p12 }
  0x4f   :  { %p3855_p1 = pnand %p3854_p0, %p3848_p11 }
  0x51   :  { %3858 = shalt.err (!%p3855_p1)
}
  0x52   :  { %97 = dma.hbm_to_vmem [thread:$0]  %s5131_s15, 768, %s92_s14, [#allocation5], %s3930_s30, %s3930_s30, %s3931_s3  }
  0x53   :  { %s3867_s6 = scalar_lea.vmem %s121_s8, 128  ;;  %p3872_p3 = scmp.lt.s32.totalorder %s121_s8, %s121_s8 }
  0x54   :  { %p3868_p2 = scmp.ne.s32.totalorder %s121_s8, %s3867_s6  ;;  %p3873_p4 = scmp.lt.s32.totalorder %s3867_s6, %s3867_s6 }
  0x56   :  { %p3874_p5 = por %p3873_p4, %p3872_p3 }
  0x58   :  { %p3875_p6 = pnand %p3874_p5, %p3868_p2 }
  0x5a   :  { %3878 = shalt.err (!%p3875_p6)
}
  0x5b   :  { %123 = dma.hbm_to_vmem [thread:$0]  %s5135_s19, 128, %s121_s8, [#allocation8]  }
  0x5c   :  { %s3938_s16 = smov [#allocation12]   ;;  %s3939_s29 = smov [#allocation15]  }
  0x5d   :  { %s148_s11 = sshll.u32 %s3938_s16, 4  ;;  %s167_s7 = sshll.u32 %s3939_s29, 4  ;;  %s149_s11 = int_to_ptr.vmem [resolvable:$true] %s148_s11  ;;  %s168_s7 = int_to_ptr.vmem [resolvable:$true] %s167_s7 }
  0x5e   :  { %s3887_s20 = scalar_lea.vmem %s149_s11, 16  ;;  %s3891_s15 = scalar_lea.vmem %s149_s11, 32 }
  0x5f   :  { %p3888_p7 = scmp.ne.s32.totalorder %s149_s11, %s3887_s20  ;;  %p3892_p8 = scmp.lt.s32.totalorder %s149_s11, %s149_s11 }
  0x60   :  { %p3893_p9 = scmp.lt.s32.totalorder %s3891_s15, %s3887_s20 }
  0x62   :  { %p3894_p10 = por %p3893_p9, %p3892_p8 }
  0x64   :  { %p3895_p11 = pnand %p3894_p10, %p3888_p7 }
  0x66   :  { %3898 = shalt.err (!%p3895_p11)
}
  0x67   :  { %151 = dma.hbm_to_vmem [thread:$0]  %s5141_s25, 16, %s149_s11, [#allocation11]  }
  0x68   :  { %s3907_s1 = scalar_lea.vmem %s168_s7, 2048  ;;  %p3912_p13 = scmp.lt.s32.totalorder %s168_s7, %s168_s7 }
  0x69   :  { %p3908_p12 = scmp.ne.s32.totalorder %s168_s7, %s3907_s1  ;;  %p3913_p0 = scmp.lt.s32.totalorder %s3907_s1, %s3907_s1 }
  0x6b   :  { %p3914_p1 = por %p3913_p0, %p3912_p13 }
  0x6d   :  { %p3915_p2 = pnand %p3914_p1, %p3908_p12 }
  0x6f   :  { %3918 = shalt.err (!%p3915_p2)
}
  0x70   :  { %173 = dma.hbm_to_vmem [thread:$0]  %s5143_s27, 2048, %s168_s7, [#allocation14], %s3930_s30, %s3930_s30, %s3931_s3  }
  0x71   :  { %3919 = dma.done.wait [#allocation3], 128  }
  0x72   :  { %3920 = vsyncadd [#allocation3], 4294967168 }
  0x73   :  { %3921 = dma.done.wait [#allocation5], 1536  }
  0x74   :  { %3922 = vsyncadd [#allocation5], 4294965760 }
  0x75   :  { %3923 = dma.done.wait [#allocation8], 896  }
  0x76   :  { %3924 = vsyncadd [#allocation8], 4294966400 }
  0x77   :  { %3925 = dma.done.wait [#allocation11], 144  }
  0x78   :  { %3926 = vsyncadd [#allocation11], 4294967152 }
  0x79   :  { %3927 = dma.done.wait [#allocation14], 2064  }
  0x7a   :  { %3928 = vsyncadd [#allocation14], 4294965232  ;;  %v3940_v0 = vmov 0.0   ;;  %s5168_s8 = sld [smem:[#allocation26_spill]]  ;;  %vm246_vm0 = vcmask 523264   ;;  %vm405_vm1 = vcmask 392192  }
  0x7b   :  { %317 = vmatprep.mubr.f32.mxu0 %v3940_v0  ;;  %s5169_s12 = sld [smem:[#allocation21_spill]]  ;;  %vm499_vm2 = vcmask 130048   ;;  %vm3941_vm3 = vmmov 0   ;;  %vm1177_vm4 = vcmask 785408   ;;  %vm1257_vm5 = vcmask 64512  }
  0x7c   :  { %s5170_s16 = sld [smem:[#allocation24_spill]] }
  0x7d   :  { %s5171_s20 = sld [smem:[#allocation28_spill]] }
  0x7e   :  { %s5174_s14 = sld [smem:[#allocation22_spill]] }
  0x7f   :  { %s5175_s1 = sld [smem:[#allocation32_spill]] }
  0x80   :  { %v244_v1 = vld [vmem:[%s5168_s8 + $0xb0] sm:$0xff]  ;;  %v243_v2 = vld [vmem:[%s5168_s8 + $0xa8] sm:$0xff]  ;;  %v241_v3 = vld [vmem:[%s5168_s8 + $0x98] sm:$0xff]  ;;  %s5177_s2 = sld [smem:[#allocation33_spill]] }
  0x81   :  { %269 = vmatprep.subr.mxu0 %v244_v1  ;;  %v240_v4 = vld [vmem:[%s5168_s8 + $0x90] sm:$0xff]  ;;  %v238_v5 = vld [vmem:[%s5168_s8 + $0x80] sm:$0xff]  ;;  %v237_v6 = vld [vmem:[%s5168_s8 + $0x78] sm:$0xff]  ;;  %s5178_s29 = sld [smem:[#allocation29_spill]] }
  0x82   :  { %270 = vmatpush1.msra.mxu0 %v243_v2  ;;  %v235_v7 = vld [vmem:[%s5168_s8 + $0x68] sm:$0xff]  ;;  %v234_v8 = vld [vmem:[%s5168_s8 + $0x60] sm:$0xff]  ;;  %v232_v10 = vld [vmem:[%s5168_s8 + $0x50] sm:$0xff] }
  0x83   :  { %271 = vmatprep.subr.mxu0 %v241_v3  ;;  %v201_v9 = vld [vmem:[%s5169_s12] sm:$0xff]  ;;  %v231_v11 = vld [vmem:[%s5168_s8 + $0x48] sm:$0xff]  ;;  %v229_v12 = vld [vmem:[%s5168_s8 + $0x38] sm:$0xff] }
  0x84   :  { %272 = vmatpush1.msra.mxu0 %v240_v4  ;;  %3251 = vmatprep.mubr.msk.f32.mxu1 %vm246_vm0, %v201_v9  ;;  %v228_v13 = vld [vmem:[%s5168_s8 + $0x30] sm:$0xff]  ;;  %v226_v14 = vld [vmem:[%s5168_s8 + $0x20] sm:$0xff]  ;;  %v225_v15 = vld [vmem:[%s5168_s8 + $0x18] sm:$0xff] }
  0x85   :  { %273 = vmatprep.subr.mxu0 %v238_v5  ;;  %v223_v16 = vld [vmem:[%s5168_s8 + $0x8] sm:$0xff]  ;;  %v222_v17 = vld [vmem:[%s5168_s8] sm:$0xff]  ;;  %v245_v23 = vld [vmem:[%s5168_s8 + $0xb8] sm:$0xff] }
  0x86   :  { %274 = vmatpush1.msra.mxu0 %v237_v6  ;;  %v202_v18 = vld [vmem:[%s5169_s12 + $0x8] sm:$0xff]  ;;  %v242_v24 = vld [vmem:[%s5168_s8 + $0xa0] sm:$0xff]  ;;  %3235 = vmatprep.subr.mxu1 %v245_v23  ;;  %v236_v26 = vld [vmem:[%s5168_s8 + $0x70] sm:$0xff]  ;;  %s5172_s12 = sld [smem:[#allocation27_spill]] }
  0x87   :  { %275 = vmatprep.subr.mxu0 %v235_v7  ;;  %3236 = vmatpush3.msra.mxu1 %v245_v23  ;;  %v239_v25 = vld [vmem:[%s5168_s8 + $0x88] sm:$0xff]  ;;  %v233_v27 = vld [vmem:[%s5168_s8 + $0x58] sm:$0xff]  ;;  %v230_v28 = vld [vmem:[%s5168_s8 + $0x40] sm:$0xff] }
  0x88   :  { %276 = vmatpush1.msra.mxu0 %v234_v8  ;;  %3237 = vmatprep.subr.mxu1 %v242_v24  ;;  %v227_v29 = vld [vmem:[%s5168_s8 + $0x28] sm:$0xff]  ;;  %v224_v30 = vld [vmem:[%s5168_s8 + $0x10] sm:$0xff]  ;;  %v495_v33 = vld [vmem:[%s5170_s16] sm:$0xff]  ;;  %s5176_s8 = sld [smem:[#allocation23_spill]] }
  0x89   :  { %277 = vmatprep.subr.mxu0 %v232_v10  ;;  %3238 = vmatpush3.msra.mxu1 %v242_v24  ;;  %v496_v36 = vld [vmem:[%s5170_s16 + $0x8] sm:$0xff]  ;;  %v4234_v3 = vld [vmem:[#allocation9] sm:$0xff]  ;;  %v4236_v4 = vld [vmem:[#allocation10] sm:$0xff] }
  0x8a   :  { %278 = vmatpush1.msra.mxu0 %v231_v11  ;;  %3239 = vmatprep.subr.mxu1 %v239_v25  ;;  %v766_v6 = vld [vmem:[%s5171_s20 + $0x28] sm:$0xff]  ;;  %v765_v8 = vld [vmem:[%s5171_s20 + $0x20] sm:$0xff]  ;;  %v764_v10 = vld [vmem:[%s5171_s20 + $0x18] sm:$0xff] }
  0x8b   :  { %279 = vmatprep.subr.mxu0 %v229_v12  ;;  %3240 = vmatpush3.msra.mxu1 %v239_v25  ;;  %v763_v12 = vld [vmem:[%s5171_s20 + $0x10] sm:$0xff] }
  0x8c   :  { %280 = vmatpush1.msra.mxu0 %v228_v13  ;;  %3241 = vmatprep.subr.mxu1 %v236_v26  ;;  %v760_v7 = vld [vmem:[%s5172_s12 + $0x28] sm:$0xff]  ;;  %v758_v11 = vld [vmem:[%s5172_s12 + $0x18] sm:$0xff]  ;;  %v757_v13 = vld [vmem:[%s5172_s12 + $0x10] sm:$0xff] }
  0x8d   :  { %281 = vmatprep.subr.mxu0 %v226_v14  ;;  %3242 = vmatpush3.msra.mxu1 %v236_v26  ;;  %v762_v14 = vld [vmem:[%s5171_s20 + $0x8] sm:$0xff]  ;;  %v4308_v24 = vld [vmem:[#allocation15 + $0x68] sm:$0xff] }
  0x8e   :  { %282 = vmatpush1.msra.mxu0 %v225_v15  ;;  %3243 = vmatprep.subr.mxu1 %v233_v27  ;;  %v756_v15 = vld [vmem:[%s5172_s12 + $0x8] sm:$0xff] }
  0x8f   :  { %283 = vmatprep.subr.mxu0 %v223_v16  ;;  %3244 = vmatpush3.msra.mxu1 %v233_v27  ;;  %v761_v16 = vld [vmem:[%s5171_s20] sm:$0xff]  ;;  %v4314_v25 = vld [vmem:[#allocation15 + $0x60] sm:$0xff]  ;;  %s5179_s20 = sld [smem:[#allocation30_spill]] }
  0x90   :  { %284 = vmatpush1.msra.mxu0 %v222_v17  ;;  %3245 = vmatprep.subr.mxu1 %v230_v28  ;;  %v755_v17 = vld [vmem:[%s5172_s12] sm:$0xff] }
  0x91   :  { %2903 = vmatmul.mubr.msk.f32.vlgmr.msra.gmra.mxu0 %vm246_vm0, %v201_v9  ;;  %3246 = vmatpush3.msra.mxu1 %v230_v28  ;;  %v759_v9 = vld [vmem:[%s5172_s12 + $0x20] sm:$0xff]  ;;  %v4332_v28 = vld [vmem:[#allocation15 + $0x48] sm:$0xff]  ;;  %s5173_s12 = sld [smem:[#allocation31_spill]] }
  0x92   :  { %323 = vmatprep.mubr.f32.mxu0 %v3940_v0  ;;  %3247 = vmatprep.subr.mxu1 %v227_v29  ;;  %v4320_v26 = vld [vmem:[#allocation15 + $0x58] sm:$0xff]  ;;  %v4326_v27 = vld [vmem:[#allocation15 + $0x50] sm:$0xff] }
  0x93   :  { %3248 = vmatpush3.msra.mxu1 %v227_v29  ;;  %v4338_v29 = vld [vmem:[#allocation15 + $0x40] sm:$0xff] }
  0x94   :  { %3249 = vmatprep.subr.mxu1 %v224_v30 }
  0x95   :  { %2904 = vmatmul.mubr.msk.f32.gmra.mxu0 %vm246_vm0, %v202_v18  ;;  %3250 = vmatpush3.msra.mxu1 %v224_v30  ;;  %v4344_v30 = vld [vmem:[#allocation15 + $0x38] sm:$0xff] }
  0x96   :  { %3252 = vmatmul.mubr.msk.f32.vlgmr.msra.gmra.mxu1 %vm246_vm0, %v202_v18  ;;  %v4298_v18 = vld [vmem:[#allocation15 + $0x78] sm:$0xff] }
 0x151   :  { %v319_v19 = vpop.f32.mrf.mxu0 }
 0x152   :  { %3258 = vmatprep.mubr.msk.f32.mxu0 %vm405_vm1, %v319_v19 }
 0x153   :  { %v321_v20 = vpop.f32.mrf.mxu0 }
 0x155   :  { %v325_v21 = vpop.f32.mrf.mxu0 }
 0x156   :  { %v3253_v51 = vpop.f32.mrf.mxu1 }
 0x157   :  { %v327_v22 = vpop.f32.mrf.mxu0  ;;  %3261 = vmatprep.subr.mxu1 %v3253_v51 }
 0x158   :  { %3254 = vmatprep.subr.msk.mxu0 %vm405_vm1, %v327_v22  ;;  %v396_v52 = vpop.f32.mrf.mxu1  ;;  %3262 = vmatpush3.msra.mxu1 %v3253_v51  ;;  %v1099_v51 = vld [vmem:[%s5173_s12 + $0xc8] sm:$0xff] }
 0x159   :  { %3255 = vmatpush3.xpose.msk.msra.mxu0 %vm405_vm1, %v327_v22  ;;  %3263 = vmatprep.subr.mxu1 %v396_v52 }
 0x15a   :  { %3256 = vmatprep.subr.msk.mxu0 %vm405_vm1, %v321_v20  ;;  %3264 = vmatpush3.msra.mxu1 %v396_v52  ;;  %v1098_v52 = vld [vmem:[%s5173_s12 + $0xc0] sm:$0xff] }
 0x15b   :  { %3268 = vmatprep.subr.mxu1 %v3940_v0 }
 0x15d   :  { %3257 = vmatpush3.xpose.msk.msra.mxu0 %vm405_vm1, %v321_v20 }
 0x15e   :  { %3275 = vmatprep.subr.mxu0 %v3940_v0 }
 0x160   :  { %3259 = vmatmul.mubr.msk.f32.vlgmr.msra.gmra.mxu0 %vm405_vm1, %v325_v21  ;;  %v4302_v21 = vld [vmem:[#allocation15 + $0x70] sm:$0xff] }
 0x161   :  { %3279 = vmatprep.mubr.msk.f32.mxu0 %vm3941_vm3, %v3940_v0 }
 0x220   :  { %v3260_v31 = vpop.f32.mrf.mxu0 }
 0x221   :  { %v494_v34 = vmul.f32 0.25, %v3260_v31  ;;  %v4350_v31 = vld [vmem:[#allocation15 + $0x30] sm:$0xff] }
 0x222   :  { %v484_v32 = vpop.f32.mrf.mxu0 }
 0x223   :  { %v493_v35 = vmul.f32 0.25, %v484_v32  ;;  %v498_v39 = vadd.f32 %v496_v36, %v494_v34  ;;  %v4356_v32 = vld [vmem:[#allocation15 + $0x28] sm:$0xff]  ;;  %v4368_v34 = vld [vmem:[#allocation15 + $0x18] sm:$0xff] }
 0x224   :  { %v4388_v36 = vld [vmem:[#allocation15 + $0x8] sm:$0xff] }
 0x225   :  { %v497_v37 = vadd.f32 %v495_v33, %v493_v35  ;;  %v503_v40 = vsel %vm499_vm2, %v498_v39, -inf  ;;  %v4362_v33 = vld [vmem:[#allocation15 + $0x20] sm:$0xff]  ;;  %v4374_v35 = vld [vmem:[#allocation15 + $0x10] sm:$0xff] }
 0x227   :  { %v500_v38 = vsel %vm499_vm2, %v497_v37, -inf }
 0x228   :  { %501 = vmax.xlane.f32.xlu0 %v500_v38  ;;  %v1105_v38 = vld [vmem:[%s5173_s12 + $0xf8] sm:$0xff] }
 0x22c   :  { %504 = vmax.xlane.f32.xlu0 %v503_v40  ;;  %v4405_v40 = vld [vmem:[%s5174_s14] sm:$0xff] }
 0x2b1   :  { %v502_v41 = vpop.xlane.xlu0 %501 }
 0x2b2   :  { %v506_v42 = vsub.f32 %v497_v37, %v502_v41  ;;  %v4393_v37 = vld [vmem:[#allocation15] sm:$0xff] }
 0x2b4   :  { %v508_v43 = vmul.f32 1.442695, %v506_v42 }
 0x2b5   :  { %v505_v44 = vpop.xlane.xlu0 %504 }
 0x2b6   :  { %3697 = vpow2.f32 %v508_v43  ;;  %v507_v45 = vsub.f32 %v498_v39, %v505_v44 }
 0x2b8   :  { %v510_v46 = vmul.f32 1.442695, %v507_v45 }
 0x2ba   :  { %3699 = vpow2.f32 %v510_v46  ;;  %v1104_v46 = vld [vmem:[%s5173_s12 + $0xf0] sm:$0xff] }
 0x2c3   :  { %v3698_v47 = vpop.eup %3697 }
 0x2c4   :  { %v512_v48 = vsel %vm499_vm2, %v3698_v47, 0.0 }
 0x2c5   :  { %513 = vadd.xlane.f32.xlu1 %v512_v48  ;;  %v1102_v48 = vld [vmem:[%s5173_s12 + $0xe0] sm:$0xff] }
 0x2c7   :  { %v3700_v49 = vpop.eup %3699 }
 0x2c8   :  { %v515_v50 = vsel %vm499_vm2, %v3700_v49, 0.0 }
 0x2c9   :  { %516 = vadd.xlane.f32.xlu1 %v515_v50  ;;  %v1100_v50 = vld [vmem:[%s5173_s12 + $0xd0] sm:$0xff] }
 0x34e   :  { %v514_v53 = vpop.xlane.xlu1 %513 }
 0x34f   :  { %3701 = vrcp.f32 %v514_v53 }
 0x352   :  { %v517_v54 = vpop.xlane.xlu1 %516 }
 0x353   :  { %3703 = vrcp.f32 %v517_v54 }
 0x35c   :  { %v3702_v55 = vpop.eup %3701 }
 0x35d   :  { %v520_v56 = vmul.f32 %v3702_v55, %v514_v53  ;;  %v1097_v53 = vld [vmem:[%s5173_s12 + $0xb8] sm:$0xff] }
 0x35f   :  { %v522_v57 = vsub.f32 2.0, %v520_v56  ;;  %v1094_v56 = vld [vmem:[%s5173_s12 + $0xa0] sm:$0xff] }
 0x360   :  { %v3704_v58 = vpop.eup %3703 }
 0x361   :  { %v524_v59 = vmul.f32 %v3702_v55, %v522_v57  ;;  %v521_v60 = vmul.f32 %v3704_v58, %v517_v54  ;;  %v1096_v54 = vld [vmem:[%s5173_s12 + $0xb0] sm:$0xff]  ;;  %v1095_v55 = vld [vmem:[%s5173_s12 + $0xa8] sm:$0xff]  ;;  %v1093_v57 = vld [vmem:[%s5173_s12 + $0x98] sm:$0xff] }
 0x363   :  { %v526_v61 = vmul.f32 %v3698_v47, %v524_v59  ;;  %v523_v62 = vsub.f32 2.0, %v521_v60  ;;  %v1103_v47 = vld [vmem:[%s5173_s12 + $0xe8] sm:$0xff]  ;;  %v1090_v60 = vld [vmem:[%s5173_s12 + $0x80] sm:$0xff] }
 0x364   :  { %v1091_v59 = vld [vmem:[%s5173_s12 + $0x88] sm:$0xff] }
 0x365   :  { %v525_v63 = vmul.f32 %v3704_v58, %v523_v62  ;;  %3265 = vmatprep.mubr.msk.f32.mxu1 %vm499_vm2, %v526_v61  ;;  %v1092_v58 = vld [vmem:[%s5173_s12 + $0x90] sm:$0xff]  ;;  %v1089_v61 = vld [vmem:[%s5173_s12 + $0x78] sm:$0xff] }
 0x366   :  { %v1088_v62 = vld [vmem:[%s5173_s12 + $0x70] sm:$0xff] }
 0x367   :  { %v527_v1 = vmul.f32 %v3700_v49, %v525_v63  ;;  %v1101_v49 = vld [vmem:[%s5173_s12 + $0xd8] sm:$0xff]  ;;  %v1087_v63 = vld [vmem:[%s5173_s12 + $0x68] sm:$0xff] }
 0x369   :  { %3266 = vmatmul.mubr.msk.f32.vlgmr.msra.gmra.mxu1 %vm499_vm2, %v527_v1  ;;  %v1086_v1 = vld [vmem:[%s5173_s12 + $0x60] sm:$0xff] }
 0x36a   :  { %3272 = vmatprep.mubr.msk.f32.mxu1 %vm3941_vm3, %v3940_v0 }
 0x429   :  { %v3267_v2 = vpop.f32.mrf.mxu1 }
 0x42a   :  { %3269 = vmatpush3.msra.mxu1 %v3267_v2  ;;  %3276 = vmatpush3.msra.mxu0 %v3267_v2  ;;  %v1085_v2 = vld [vmem:[%s5173_s12 + $0x58] sm:$0xff] }
 0x42b   :  { %v600_v5 = vpop.f32.mrf.mxu1  ;;  %3270 = vmatprep.subr.mxu1 %v3940_v0  ;;  %3277 = vmatprep.subr.mxu0 %v3940_v0 }
 0x42c   :  { %3271 = vmatpush3.msra.mxu1 %v600_v5  ;;  %3278 = vmatpush3.msra.mxu0 %v600_v5  ;;  %v1084_v5 = vld [vmem:[%s5173_s12 + $0x50] sm:$0xff] }
 0x42d   :  { %3273 = vmatmul.mubr.msk.f32.vlgmr.msra.gmra.mxu1 %vm499_vm2, %v4234_v3  ;;  %3280 = vmatmul.mubr.msk.f32.vlgmr.msra.gmra.mxu0 %vm499_vm2, %v4236_v4 }
 0x42e   :  { %3282 = vmatprep.subr.mxu1 %v3940_v0  ;;  %3297 = vmatprep.subr.mxu0 %v3940_v0 }
 0x42f   :  { %3283 = vmatpush3.msra.mxu1 %v766_v6  ;;  %3298 = vmatpush3.msra.mxu0 %v760_v7  ;;  %v1083_v6 = vld [vmem:[%s5173_s12 + $0x48] sm:$0xff]  ;;  %v1082_v7 = vld [vmem:[%s5173_s12 + $0x40] sm:$0xff] }
 0x430   :  { %3284 = vmatprep.subr.mxu1 %v3940_v0  ;;  %3299 = vmatprep.subr.mxu0 %v3940_v0 }
 0x431   :  { %3285 = vmatpush3.msra.mxu1 %v765_v8  ;;  %3300 = vmatpush3.msra.mxu0 %v759_v9  ;;  %v1081_v8 = vld [vmem:[%s5173_s12 + $0x38] sm:$0xff]  ;;  %v1080_v9 = vld [vmem:[%s5173_s12 + $0x30] sm:$0xff] }
 0x432   :  { %3286 = vmatprep.subr.mxu1 %v3940_v0  ;;  %3301 = vmatprep.subr.mxu0 %v3940_v0 }
 0x433   :  { %3287 = vmatpush3.msra.mxu1 %v764_v10  ;;  %3302 = vmatpush3.msra.mxu0 %v758_v11  ;;  %v1079_v10 = vld [vmem:[%s5173_s12 + $0x28] sm:$0xff]  ;;  %v1078_v11 = vld [vmem:[%s5173_s12 + $0x20] sm:$0xff] }
 0x434   :  { %3288 = vmatprep.subr.mxu1 %v3940_v0  ;;  %3303 = vmatprep.subr.mxu0 %v3940_v0 }
 0x435   :  { %3289 = vmatpush3.msra.mxu1 %v763_v12  ;;  %3304 = vmatpush3.msra.mxu0 %v757_v13  ;;  %v1077_v12 = vld [vmem:[%s5173_s12 + $0x18] sm:$0xff]  ;;  %v1076_v13 = vld [vmem:[%s5173_s12 + $0x10] sm:$0xff] }
 0x436   :  { %3290 = vmatprep.subr.mxu1 %v3940_v0  ;;  %3305 = vmatprep.subr.mxu0 %v3940_v0 }
 0x437   :  { %3291 = vmatpush3.msra.mxu1 %v762_v14  ;;  %3306 = vmatpush3.msra.mxu0 %v756_v15  ;;  %v1075_v14 = vld [vmem:[%s5173_s12 + $0x8] sm:$0xff]  ;;  %v1074_v15 = vld [vmem:[%s5173_s12] sm:$0xff] }
 0x438   :  { %3292 = vmatprep.subr.mxu1 %v3940_v0  ;;  %3307 = vmatprep.subr.mxu0 %v3940_v0 }
 0x439   :  { %3294 = vmatprep.mubr.msk.f32.mxu1 %vm3941_vm3, %v3940_v0  ;;  %3309 = vmatprep.mubr.msk.f32.mxu0 %vm3941_vm3, %v3940_v0 }
 0x43a   :  { %3293 = vmatpush3.msra.mxu1 %v761_v16  ;;  %3308 = vmatpush3.msra.mxu0 %v755_v17 }
 0x43b   :  { %3312 = vmatprep.subr.mxu1 %v3940_v0  ;;  %3347 = vmatprep.subr.mxu0 %v3940_v0 }
 0x4ed   :  { %v678_v19 = vpop.f32.mrf.mxu1  ;;  %v751_v20 = vpop.f32.mrf.mxu0 }
 0x4ee   :  { %3295 = vmatmul.mubr.msk.f32.vlgmr.msra.gmra.mxu1 %vm405_vm1, %v751_v20  ;;  %3310 = vmatmul.mubr.msk.f32.vlgmr.msra.gmra.mxu0 %vm405_vm1, %v678_v19 }
 0x4ef   :  { %v3274_v22 = vpop.f32.mrf.mxu1  ;;  %v3281_v23 = vpop.f32.mrf.mxu0  ;;  %3313 = vmatpush3.msra.mxu1 %v4298_v18  ;;  %3344 = vmatprep.mubr.msk.f32.mxu1 %vm3941_vm3, %v3940_v0 }
 0x4f0   :  { %3314 = vmatprep.subr.mxu1 %v3940_v0  ;;  %3348 = vmatpush3.msra.mxu0 %v4298_v18 }
 0x4f1   :  { %3315 = vmatpush3.msra.mxu1 %v4302_v21  ;;  %3349 = vmatprep.subr.mxu0 %v3940_v0 }
 0x4f2   :  { %3316 = vmatprep.subr.mxu1 %v3940_v0  ;;  %3350 = vmatpush3.msra.mxu0 %v4302_v21 }
 0x4f3   :  { %3317 = vmatpush3.msra.mxu1 %v4308_v24  ;;  %3351 = vmatprep.subr.mxu0 %v3940_v0 }
 0x4f4   :  { %3318 = vmatprep.subr.mxu1 %v3940_v0  ;;  %3352 = vmatpush3.msra.mxu0 %v4308_v24 }
 0x4f5   :  { %3319 = vmatpush3.msra.mxu1 %v4314_v25  ;;  %3353 = vmatprep.subr.mxu0 %v3940_v0 }
 0x4f6   :  { %3320 = vmatprep.subr.mxu1 %v3940_v0  ;;  %3354 = vmatpush3.msra.mxu0 %v4314_v25 }
 0x4f7   :  { %3321 = vmatpush3.msra.mxu1 %v4320_v26  ;;  %3355 = vmatprep.subr.mxu0 %v3940_v0 }
 0x4f8   :  { %3322 = vmatprep.subr.mxu1 %v3940_v0  ;;  %3356 = vmatpush3.msra.mxu0 %v4320_v26 }
 0x4f9   :  { %3323 = vmatpush3.msra.mxu1 %v4326_v27  ;;  %3357 = vmatprep.subr.mxu0 %v3940_v0 }
 0x4fa   :  { %3324 = vmatprep.subr.mxu1 %v3940_v0  ;;  %3358 = vmatpush3.msra.mxu0 %v4326_v27 }
 0x4fb   :  { %3325 = vmatpush3.msra.mxu1 %v4332_v28  ;;  %3359 = vmatprep.subr.mxu0 %v3940_v0 }
 0x4fc   :  { %3326 = vmatprep.subr.mxu1 %v3940_v0  ;;  %3360 = vmatpush3.msra.mxu0 %v4332_v28 }
 0x4fd   :  { %3327 = vmatpush3.msra.mxu1 %v4338_v29  ;;  %3361 = vmatprep.subr.mxu0 %v3940_v0 }
 0x4fe   :  { %3328 = vmatprep.subr.mxu1 %v3940_v0  ;;  %3362 = vmatpush3.msra.mxu0 %v4338_v29 }
 0x4ff   :  { %3329 = vmatpush3.msra.mxu1 %v4344_v30  ;;  %3363 = vmatprep.subr.mxu0 %v3940_v0 }
 0x500   :  { %3330 = vmatprep.subr.mxu1 %v3940_v0  ;;  %3364 = vmatpush3.msra.mxu0 %v4344_v30 }
 0x501   :  { %3331 = vmatpush3.msra.mxu1 %v4350_v31  ;;  %3365 = vmatprep.subr.mxu0 %v3940_v0 }
 0x502   :  { %3332 = vmatprep.subr.mxu1 %v3940_v0  ;;  %3366 = vmatpush3.msra.mxu0 %v4350_v31 }
 0x503   :  { %3333 = vmatpush3.msra.mxu1 %v4356_v32  ;;  %3367 = vmatprep.subr.mxu0 %v3940_v0 }
 0x504   :  { %3334 = vmatprep.subr.mxu1 %v3940_v0  ;;  %3368 = vmatpush3.msra.mxu0 %v4356_v32 }
 0x505   :  { %3335 = vmatpush3.msra.mxu1 %v4362_v33  ;;  %3369 = vmatprep.subr.mxu0 %v3940_v0 }
 0x506   :  { %3336 = vmatprep.subr.mxu1 %v3940_v0  ;;  %3370 = vmatpush3.msra.mxu0 %v4362_v33 }
 0x507   :  { %3337 = vmatpush3.msra.mxu1 %v4368_v34  ;;  %3371 = vmatprep.subr.mxu0 %v3940_v0 }
 0x508   :  { %3338 = vmatprep.subr.mxu1 %v3940_v0  ;;  %3372 = vmatpush3.msra.mxu0 %v4368_v34 }
 0x509   :  { %3339 = vmatpush3.msra.mxu1 %v4374_v35  ;;  %3373 = vmatprep.subr.mxu0 %v3940_v0 }
 0x50a   :  { %3340 = vmatprep.subr.mxu1 %v3940_v0  ;;  %3374 = vmatpush3.msra.mxu0 %v4374_v35 }
 0x50b   :  { %3375 = vmatprep.subr.mxu0 %v3940_v0  ;;  %3379 = vmatprep.mubr.msk.f32.mxu0 %vm3941_vm3, %v3940_v0 }
 0x50c   :  { %3341 = vmatpush3.msra.mxu1 %v4388_v36  ;;  %3376 = vmatpush3.msra.mxu0 %v4388_v36 }
 0x50d   :  { %3342 = vmatprep.subr.mxu1 %v3940_v0  ;;  %3377 = vmatprep.subr.mxu0 %v3940_v0 }
 0x50e   :  { %3343 = vmatpush3.msra.mxu1 %v4393_v37  ;;  %3378 = vmatpush3.msra.mxu0 %v4393_v37 }
 0x50f   :  { %1106 = vmatprep.subr.mxu1 %v1105_v38  ;;  %3382 = vmatprep.subr.mxu0 %v3940_v0 }
 0x5ae   :  { %v836_v39 = vpop.f32.mrf.mxu1  ;;  %v909_v41 = vpop.f32.mrf.mxu0 }
 0x5af   :  { %v910_v42 = vadd.f32 %v909_v41, %v836_v39 }
 0x5b0   :  { %v3296_v43 = vpop.f32.mrf.mxu1  ;;  %v3311_v44 = vpop.f32.mrf.mxu0 }
 0x5b1   :  { %v4408_v45 = vadd.f32 %v910_v42, %v4405_v40  ;;  %v1255_v42 = vld [vmem:[#allocation2] sm:$0xff] }
 0x5b3   :  { %3345 = vmatmul.mubr.f32.vlgmr.msra.gmra.mxu1 %v4408_v45 }
 0x5b4   :  { %1107 = vmatpush1.msra.mxu1 %v1104_v46  ;;  %1170 = vmatprep.mubr.f32.mxu1 %v3940_v0 }
 0x5b5   :  { %1108 = vmatprep.subr.mxu1 %v1103_v47 }
 0x5b6   :  { %1109 = vmatpush1.msra.mxu1 %v1102_v48 }
 0x5b7   :  { %1110 = vmatprep.subr.mxu1 %v1101_v49 }
 0x5b8   :  { %1111 = vmatpush1.msra.mxu1 %v1100_v50 }
 0x5b9   :  { %1112 = vmatprep.subr.mxu1 %v1099_v51 }
 0x5ba   :  { %1113 = vmatpush1.msra.mxu1 %v1098_v52  ;;  %v1281_v52 = vld [vmem:[%s5175_s1 + $0x38] sm:$0xff] }
 0x5bb   :  { %1114 = vmatprep.subr.mxu1 %v1097_v53  ;;  %v1280_v53 = vld [vmem:[%s5175_s1 + $0x30] sm:$0xff] }
 0x5bc   :  { %1115 = vmatpush1.msra.mxu1 %v1096_v54  ;;  %v1279_v54 = vld [vmem:[%s5175_s1 + $0x28] sm:$0xff] }
 0x5bd   :  { %1116 = vmatprep.subr.mxu1 %v1095_v55  ;;  %v1278_v55 = vld [vmem:[%s5175_s1 + $0x20] sm:$0xff] }
 0x5be   :  { %1117 = vmatpush1.msra.mxu1 %v1094_v56  ;;  %v1277_v56 = vld [vmem:[%s5175_s1 + $0x18] sm:$0xff] }
 0x5bf   :  { %1118 = vmatprep.subr.mxu1 %v1093_v57  ;;  %v1276_v57 = vld [vmem:[%s5175_s1 + $0x10] sm:$0xff] }
 0x5c0   :  { %1119 = vmatpush1.msra.mxu1 %v1092_v58  ;;  %v1275_v58 = vld [vmem:[%s5175_s1 + $0x8] sm:$0xff] }
 0x5c1   :  { %1120 = vmatprep.subr.mxu1 %v1091_v59  ;;  %v1274_v59 = vld [vmem:[%s5175_s1] sm:$0xff] }
 0x5c2   :  { %1121 = vmatpush1.msra.mxu1 %v1090_v60  ;;  %v1272_v60 = vld [vmem:[%s5176_s8] sm:$0xff] }
 0x5c3   :  { %1122 = vmatprep.subr.mxu1 %v1089_v61  ;;  %v1273_v61 = vld [vmem:[%s5176_s8 + $0x8] sm:$0xff] }
 0x5c4   :  { %1123 = vmatpush1.msra.mxu1 %v1088_v62  ;;  %v1369_v62 = vld [vmem:[%s5177_s2] sm:$0xff] }
 0x5c5   :  { %1124 = vmatprep.subr.mxu1 %v1087_v63 }
 0x5c6   :  { %1125 = vmatpush1.msra.mxu1 %v1086_v1 }
 0x5c7   :  { %1126 = vmatprep.subr.mxu1 %v1085_v2 }
 0x5c8   :  { %1127 = vmatpush1.msra.mxu1 %v1084_v5 }
 0x5c9   :  { %1128 = vmatprep.subr.mxu1 %v1083_v6 }
 0x5ca   :  { %1129 = vmatpush1.msra.mxu1 %v1082_v7 }
 0x5cb   :  { %1130 = vmatprep.subr.mxu1 %v1081_v8  ;;  %v1370_v8 = vld [vmem:[%s5177_s2 + $0x8] sm:$0xff] }
 0x5cc   :  { %1131 = vmatpush1.msra.mxu1 %v1080_v9  ;;  %v1374_v9 = vld [vmem:[%s5177_s2 + $0x28] sm:$0xff] }
 0x5cd   :  { %1132 = vmatprep.subr.mxu1 %v1079_v10  ;;  %v1371_v10 = vld [vmem:[%s5177_s2 + $0x10] sm:$0xff] }
 0x5ce   :  { %1133 = vmatpush1.msra.mxu1 %v1078_v11  ;;  %v1372_v11 = vld [vmem:[%s5177_s2 + $0x18] sm:$0xff] }
 0x5cf   :  { %1134 = vmatprep.subr.mxu1 %v1077_v12  ;;  %v1373_v12 = vld [vmem:[%s5177_s2 + $0x20] sm:$0xff] }
 0x5d0   :  { %1135 = vmatpush1.msra.mxu1 %v1076_v13 }
 0x5d1   :  { %1136 = vmatprep.subr.mxu1 %v1075_v14 }
 0x5d2   :  { %1137 = vmatpush1.msra.mxu1 %v1074_v15 }
 0x5d3   :  { %1171 = vmatmul.mubr.f32.vlgmr.msra.gmra.mxu1 %v4405_v40  ;;  %3438 = vmatprep.subr.mxu1 %v3940_v0 }
 0x5d4   :  { %3450 = vmatprep.mubr.msk.f32.mxu1 %vm3941_vm3, %v3940_v0 }
 0x673   :  { %v982_v16 = vpop.f32.mrf.mxu1 }
 0x674   :  { %v4510_v17 = vsub.f32 %v4408_v45, %v982_v16 }
 0x675   :  { %v3346_v19 = vpop.f32.mrf.mxu1 }
 0x676   :  { %v987_v20 = vmul.f32 %v4510_v17, %v4510_v17 }
 0x678   :  { %3380 = vmatmul.mubr.f32.vlgmr.msra.gmra.mxu0 %v987_v20 }
 0x679   :  { %3384 = vmatprep.mubr.msk.f32.mxu0 %vm3941_vm3, %v3940_v0 }
 0x693   :  { %v1172_v22 = vpop.f32.mrf.mxu1 }
 0x695   :  { %v1174_v23 = vpop.f32.mrf.mxu1 }
 0x696   :  { %3383 = vmatpush3.xpose.msk.msra.mxu0 %vm1177_vm4, %v1174_v23 }
 0x697   :  { %3387 = vmatprep.subr.mxu0 %v1281_v52 }
 0x699   :  { %3385 = vmatmul.mubr.msk.f32.vlgmr.msra.gmra.mxu0 %vm1177_vm4, %v1172_v22 }
 0x69a   :  { %3388 = vmatpush3.msra.mxu0 %v1281_v52  ;;  %3403 = vmatprep.mubr.msk.f32.mxu0 %vm246_vm0, %v1272_v60  ;;  %v1380_v60 = vld [vmem:[%s5129_s13 + $0x28] sm:$0xff] }
 0x69b   :  { %3389 = vmatprep.subr.mxu0 %v1280_v53 }
 0x69c   :  { %3390 = vmatpush3.msra.mxu0 %v1280_v53  ;;  %v4617_v53 = vld [vmem:[#allocation4 + $0x8] sm:$0xff] }
 0x69d   :  { %3391 = vmatprep.subr.mxu0 %v1279_v54 }
 0x69e   :  { %3392 = vmatpush3.msra.mxu0 %v1279_v54 }
 0x69f   :  { %3393 = vmatprep.subr.mxu0 %v1278_v55 }
 0x6a0   :  { %3394 = vmatpush3.msra.mxu0 %v1278_v55  ;;  %v4621_v55 = vld [vmem:[#allocation4] sm:$0xff] }
 0x6a1   :  { %3395 = vmatprep.subr.mxu0 %v1277_v56 }
 0x6a2   :  { %3396 = vmatpush3.msra.mxu0 %v1277_v56 }
 0x6a3   :  { %3397 = vmatprep.subr.mxu0 %v1276_v57 }
 0x6a4   :  { %3398 = vmatpush3.msra.mxu0 %v1276_v57 }
 0x6a5   :  { %3399 = vmatprep.subr.mxu0 %v1275_v58 }
 0x6a6   :  { %3400 = vmatpush3.msra.mxu0 %v1275_v58  ;;  %v1375_v58 = vld [vmem:[%s5129_s13] sm:$0xff] }
 0x6a7   :  { %3401 = vmatprep.subr.mxu0 %v1274_v59 }
 0x6a8   :  { %3402 = vmatpush3.msra.mxu0 %v1274_v59  ;;  %v1376_v59 = vld [vmem:[%s5129_s13 + $0x8] sm:$0xff] }
 0x6a9   :  { %3404 = vmatmul.mubr.msk.f32.vlgmr.msra.gmra.mxu0 %vm246_vm0, %v1273_v61  ;;  %v1377_v61 = vld [vmem:[%s5129_s13 + $0x10] sm:$0xff] }
 0x6aa   :  { %3408 = vmatprep.mubr.msk.f32.mxu0 %vm1257_vm5, %v1369_v62 }
 0x738   :  { %v4516_v38 = vpop.f32.mrf.mxu0 }
 0x73a   :  { %v3381_v39 = vpop.f32.mrf.mxu0 }
 0x759   :  { %v1250_v41 = vpop.f32.mrf.mxu0 }
 0x75a   :  { %v1254_v43 = vmul.f32 0.25, %v1250_v41 }
 0x75b   :  { %v3386_v44 = vpop.f32.mrf.mxu0 }
 0x75c   :  { %v1256_v45 = vadd.f32 %v1255_v42, %v1254_v43  ;;  %v4605_v44 = vld [vmem:[#allocation4 + $0x28] sm:$0xff] }
 0x75e   :  { %v1258_v46 = vsel %vm1257_vm5, %v1256_v45, -inf }
 0x75f   :  { %1259 = vmax.xlane.f32.xlu0 %v1258_v46  ;;  %v4607_v46 = vld [vmem:[#allocation4 + $0x20] sm:$0xff] }
 0x769   :  { %v4595_v13 = vpop.f32.mrf.mxu0 }
 0x76b   :  { %v1354_v14 = vpop.f32.mrf.mxu0 }
 0x7e8   :  { %v1260_v47 = vpop.xlane.xlu0 %1259 }
 0x7e9   :  { %v1261_v48 = vsub.f32 %v1256_v45, %v1260_v47 }
 0x7eb   :  { %v1262_v49 = vmul.f32 1.442695, %v1261_v48  ;;  %v4610_v48 = vld [vmem:[#allocation4 + $0x18] sm:$0xff] }
 0x7ed   :  { %3705 = vpow2.f32 %v1262_v49 }
 0x7fa   :  { %v3706_v50 = vpop.eup %3705 }
 0x7fb   :  { %v1264_v51 = vsel %vm1257_vm5, %v3706_v50, 0.0 }
 0x7fc   :  { %1265 = vadd.xlane.f32.xlu1 %v1264_v51  ;;  %v4613_v51 = vld [vmem:[#allocation4 + $0x10] sm:$0xff] }
 0x885   :  { %v1266_v63 = vpop.xlane.xlu1 %1265 }
 0x886   :  { %3707 = vrcp.f32 %v1266_v63 }
 0x893   :  { %v3708_v1 = vpop.eup %3707 }
 0x894   :  { %v1268_v2 = vmul.f32 %v3708_v1, %v1266_v63  ;;  %v1379_v63 = vld [vmem:[%s5129_s13 + $0x20] sm:$0xff] }
 0x896   :  { %v1269_v5 = vsub.f32 2.0, %v1268_v2 }
 0x898   :  { %v1270_v6 = vmul.f32 %v3708_v1, %v1269_v5 }
 0x89a   :  { %v4556_v7 = vmul.f32 %v3706_v50, %v1270_v6 }
 0x89c   :  { %3406 = vmatprep.subr.msk.mxu0 %vm1257_vm5, %v4556_v7 }
 0x89d   :  { %3407 = vmatpush3.xpose.msk.msra.mxu0 %vm1257_vm5, %v4556_v7 }
 0x89e   :  { %3417 = vmatprep.subr.msk.mxu0 %vm1257_vm5, %v1374_v9 }
 0x8a0   :  { %3409 = vmatmul.mubr.msk.f32.vlgmr.msra.gmra.mxu0 %vm1257_vm5, %v1370_v8 }
 0x8a1   :  { %3411 = vmatprep.mubr.msk.f32.mxu0 %vm1257_vm5, %v1371_v10  ;;  %3418 = vmatpush3.xpose.msk.msra.mxu0 %vm1257_vm5, %v1374_v9 }
 0x8a2   :  { %3419 = vmatprep.subr.msk.mxu0 %vm1257_vm5, %v1373_v12 }
 0x8a4   :  { %3412 = vmatmul.mubr.msk.f32.gmra.mxu0 %vm1257_vm5, %v1372_v11 }
 0x8a5   :  { %3414 = vmatprep.mubr.msk.f32.mxu0 %vm1257_vm5, %v1373_v12  ;;  %3420 = vmatpush3.xpose.msk.msra.mxu0 %vm1257_vm5, %v1373_v12 }
 0x8a6   :  { %3421 = vmatprep.subr.msk.mxu0 %vm1257_vm5, %v1372_v11 }
 0x8a8   :  { %3415 = vmatmul.mubr.msk.f32.gmra.mxu0 %vm1257_vm5, %v1374_v9 }
 0x8a9   :  { %3422 = vmatpush3.xpose.msk.msra.mxu0 %vm1257_vm5, %v1372_v11 }
 0x8aa   :  { %3423 = vmatprep.subr.msk.mxu0 %vm1257_vm5, %v1371_v10 }
 0x8ad   :  { %3424 = vmatpush3.xpose.msk.msra.mxu0 %vm1257_vm5, %v1371_v10 }
 0x8ae   :  { %3425 = vmatprep.subr.msk.mxu0 %vm1257_vm5, %v1370_v8 }
 0x8b1   :  { %3426 = vmatpush3.xpose.msk.msra.mxu0 %vm1257_vm5, %v1370_v8 }
 0x8b2   :  { %3427 = vmatprep.subr.msk.mxu0 %vm1257_vm5, %v1369_v62 }
 0x8b5   :  { %3428 = vmatpush3.xpose.msk.msra.mxu0 %vm1257_vm5, %v1369_v62  ;;  %v1378_v62 = vld [vmem:[%s5129_s13 + $0x18] sm:$0xff] }
 0x8b6   :  { %3485 = vmatprep.subr.mxu0 %v3940_v0 }
 0x960   :  { %v3410_v15 = vpop.f32.mrf.mxu0 }
 0x962   :  { %v1468_v16 = vpop.f32.mrf.mxu0 }
 0x963   :  { %3429 = vmatprep.mubr.msk.f32.mxu0 %vm1257_vm5, %v1468_v16 }
 0x964   :  { %v3413_v19 = vpop.f32.mrf.mxu0  ;;  %3430 = vmatmul.mubr.msk.f32.vlgmr.msra.gmra.mxu0 %vm1257_vm5, %v3410_v15 }
 0x966   :  { %v1478_v20 = vpop.f32.mrf.mxu0 }
 0x967   :  { %3432 = vmatprep.mubr.msk.f32.mxu0 %vm1257_vm5, %v1478_v20 }
 0x968   :  { %v3416_v22 = vpop.f32.mrf.mxu0  ;;  %3433 = vmatmul.mubr.msk.f32.gmra.mxu0 %vm1257_vm5, %v3413_v19 }
 0x96a   :  { %v1488_v23 = vpop.f32.mrf.mxu0 }
 0x96b   :  { %3435 = vmatprep.mubr.msk.f32.mxu0 %vm1257_vm5, %v1488_v23 }
 0x96c   :  { %3436 = vmatmul.mubr.msk.f32.gmra.mxu0 %vm1257_vm5, %v3416_v22 }
 0x96d   :  { %3497 = vmatprep.mubr.msk.f32.mxu0 %vm3941_vm3, %v3940_v0 }
 0xa24   :  { %v3431_v39 = vpop.f32.mrf.mxu0 }
 0xa25   :  { %v1611_v56 = vmul.f32 %v3431_v39, %v4617_v53 }
 0xa26   :  { %v1581_v41 = vpop.f32.mrf.mxu0 }
 0xa27   :  { %v1610_v57 = vmul.f32 %v1581_v41, %v4621_v55 }
 0xa28   :  { %v3434_v42 = vpop.f32.mrf.mxu0 }
 0xa29   :  { %v1613_v52 = vmul.f32 %v3434_v42, %v4610_v48 }
 0xa2a   :  { %v1591_v43 = vpop.f32.mrf.mxu0 }
 0xa2b   :  { %v1612_v54 = vmul.f32 %v1591_v43, %v4613_v51  ;;  %v2139_v43 = vld [vmem:[#allocation6 + $0x28] sm:$0xff] }
 0xa2c   :  { %v3437_v45 = vpop.f32.mrf.mxu0 }
 0xa2d   :  { %v1615_v47 = vmul.f32 %v3437_v45, %v4605_v44  ;;  %v2137_v45 = vld [vmem:[#allocation6 + $0x18] sm:$0xff] }
 0xa2e   :  { %v1601_v49 = vpop.f32.mrf.mxu0 }
 0xa2f   :  { %v1614_v50 = vmul.f32 %v1601_v49, %v4607_v46  ;;  %3439 = vmatpush3.msra.mxu1 %v1615_v47  ;;  %v2135_v47 = vld [vmem:[#allocation6 + $0x8] sm:$0xff]  ;;  %v2145_v49 = vld [vmem:[#allocation7 + $0x28] sm:$0xff] }
 0xa30   :  { %3440 = vmatprep.subr.mxu1 %v3940_v0 }
 0xa31   :  { %3441 = vmatpush3.msra.mxu1 %v1614_v50  ;;  %v2144_v50 = vld [vmem:[#allocation7 + $0x20] sm:$0xff] }
 0xa32   :  { %3442 = vmatprep.subr.mxu1 %v3940_v0 }
 0xa33   :  { %3443 = vmatpush3.msra.mxu1 %v1613_v52  ;;  %v2134_v52 = vld [vmem:[#allocation6] sm:$0xff] }
 0xa34   :  { %3444 = vmatprep.subr.mxu1 %v3940_v0 }
 0xa35   :  { %3445 = vmatpush3.msra.mxu1 %v1612_v54 }
 0xa36   :  { %3446 = vmatprep.subr.mxu1 %v3940_v0 }
 0xa37   :  { %3447 = vmatpush3.msra.mxu1 %v1611_v56 }
 0xa38   :  { %3448 = vmatprep.subr.mxu1 %v3940_v0 }
 0xa39   :  { %3449 = vmatpush3.msra.mxu1 %v1610_v57 }
 0xa3a   :  { %3451 = vmatmul.mubr.msk.f32.vlgmr.msra.gmra.mxu1 %vm405_vm1, %v1354_v14  ;;  %3453 = vmatprep.subr.msk.mxu1 %vm1257_vm5, %v4556_v7 }
 0xa3b   :  { %3454 = vmatpush3.xpose.msk.msra.mxu1 %vm1257_vm5, %v4556_v7  ;;  %3455 = vmatprep.mubr.msk.f32.mxu1 %vm1257_vm5, %v1375_v58 }
 0xa3c   :  { %3464 = vmatprep.subr.msk.mxu1 %vm1257_vm5, %v1380_v60 }
 0xa3e   :  { %3456 = vmatmul.mubr.msk.f32.vlgmr.msra.gmra.mxu1 %vm1257_vm5, %v1376_v59 }
 0xa3f   :  { %3458 = vmatprep.mubr.msk.f32.mxu1 %vm1257_vm5, %v1377_v61  ;;  %3465 = vmatpush3.xpose.msk.msra.mxu1 %vm1257_vm5, %v1380_v60 }
 0xa40   :  { %3466 = vmatprep.subr.msk.mxu1 %vm1257_vm5, %v1379_v63 }
 0xa42   :  { %3459 = vmatmul.mubr.msk.f32.gmra.mxu1 %vm1257_vm5, %v1378_v62 }
 0xa43   :  { %3461 = vmatprep.mubr.msk.f32.mxu1 %vm1257_vm5, %v1379_v63  ;;  %3467 = vmatpush3.xpose.msk.msra.mxu1 %vm1257_vm5, %v1379_v63  ;;  %v2473_v63 = vld [vmem:[%s5137_s21 + $0x98] sm:$0xff] }
 0xa44   :  { %3468 = vmatprep.subr.msk.mxu1 %vm1257_vm5, %v1378_v62 }
 0xa46   :  { %3462 = vmatmul.mubr.msk.f32.gmra.mxu1 %vm1257_vm5, %v1380_v60  ;;  %v2476_v60 = vld [vmem:[%s5137_s21 + $0xb0] sm:$0xff] }
 0xa47   :  { %3469 = vmatpush3.xpose.msk.msra.mxu1 %vm1257_vm5, %v1378_v62  ;;  %v2474_v62 = vld [vmem:[%s5137_s21 + $0xa0] sm:$0xff] }
 0xa48   :  { %3470 = vmatprep.subr.msk.mxu1 %vm1257_vm5, %v1377_v61 }
 0xa4b   :  { %3471 = vmatpush3.xpose.msk.msra.mxu1 %vm1257_vm5, %v1377_v61  ;;  %v2475_v61 = vld [vmem:[%s5137_s21 + $0xa8] sm:$0xff] }
 0xa4c   :  { %3472 = vmatprep.subr.msk.mxu1 %vm1257_vm5, %v1376_v59 }
 0xa4f   :  { %3473 = vmatpush3.xpose.msk.msra.mxu1 %vm1257_vm5, %v1376_v59  ;;  %v2477_v59 = vld [vmem:[%s5137_s21 + $0xb8] sm:$0xff] }
 0xa50   :  { %3474 = vmatprep.subr.msk.mxu1 %vm1257_vm5, %v1375_v58 }
 0xa53   :  { %3475 = vmatpush3.xpose.msk.msra.mxu1 %vm1257_vm5, %v1375_v58  ;;  %v2478_v58 = vld [vmem:[%s5137_s21 + $0xc0] sm:$0xff] }
 0xa54   :  { %3529 = vmatprep.subr.mxu1 %v3940_v0 }
 0xafa   :  { %v4670_v1 = vpop.f32.mrf.mxu1 }
 0xafc   :  { %v3452_v2 = vpop.f32.mrf.mxu1 }
 0xafd   :  { %v2471_v2 = vld [vmem:[%s5137_s21 + $0x88] sm:$0xff] }
 0xafe   :  { %v3457_v5 = vpop.f32.mrf.mxu1 }
 0xb00   :  { %v1773_v6 = vpop.f32.mrf.mxu1 }
 0xb01   :  { %3476 = vmatprep.mubr.msk.f32.mxu1 %vm1257_vm5, %v1773_v6  ;;  %v2469_v6 = vld [vmem:[%s5137_s21 + $0x78] sm:$0xff] }
 0xb02   :  { %v3460_v7 = vpop.f32.mrf.mxu1  ;;  %3477 = vmatmul.mubr.msk.f32.vlgmr.msra.gmra.mxu1 %vm1257_vm5, %v3457_v5  ;;  %v2470_v5 = vld [vmem:[%s5137_s21 + $0x80] sm:$0xff] }
 0xb03   :  { %3530 = vmatpush3.msra.mxu1 %v2139_v43 }
 0xb04   :  { %v1783_v8 = vpop.f32.mrf.mxu1  ;;  %3531 = vmatprep.subr.mxu1 %v3940_v0 }
 0xb05   :  { %3479 = vmatprep.mubr.msk.f32.mxu1 %vm1257_vm5, %v1783_v8  ;;  %v2467_v8 = vld [vmem:[%s5137_s21 + $0x68] sm:$0xff] }
 0xb06   :  { %v3463_v9 = vpop.f32.mrf.mxu1  ;;  %3480 = vmatmul.mubr.msk.f32.gmra.mxu1 %vm1257_vm5, %v3460_v7  ;;  %v2468_v7 = vld [vmem:[%s5137_s21 + $0x70] sm:$0xff] }
 0xb08   :  { %v1793_v10 = vpop.f32.mrf.mxu1 }
 0xb09   :  { %3482 = vmatprep.mubr.msk.f32.mxu1 %vm1257_vm5, %v1793_v10  ;;  %v2465_v10 = vld [vmem:[%s5137_s21 + $0x58] sm:$0xff] }
 0xb0a   :  { %3483 = vmatmul.mubr.msk.f32.gmra.mxu1 %vm1257_vm5, %v3463_v9  ;;  %v2466_v9 = vld [vmem:[%s5137_s21 + $0x60] sm:$0xff] }
 0xb0b   :  { %3541 = vmatprep.mubr.msk.f32.mxu1 %vm3941_vm3, %v3940_v0 }
 0xbc2   :  { %v3478_v11 = vpop.f32.mrf.mxu1 }
 0xbc3   :  { %v1916_v41 = vmul.f32 %v3478_v11, %v4617_v53  ;;  %v2140_v53 = vld [vmem:[#allocation7] sm:$0xff]  ;;  %v2464_v11 = vld [vmem:[%s5137_s21 + $0x50] sm:$0xff] }
 0xbc4   :  { %v1886_v12 = vpop.f32.mrf.mxu1 }
 0xbc5   :  { %v1915_v42 = vmul.f32 %v1886_v12, %v4621_v55  ;;  %v2463_v12 = vld [vmem:[%s5137_s21 + $0x48] sm:$0xff] }
 0xbc6   :  { %v3481_v14 = vpop.f32.mrf.mxu1 }
 0xbc7   :  { %v1918_v23 = vmul.f32 %v3481_v14, %v4610_v48  ;;  %v2462_v14 = vld [vmem:[%s5137_s21 + $0x40] sm:$0xff] }
 0xbc8   :  { %v1896_v15 = vpop.f32.mrf.mxu1 }
 0xbc9   :  { %v1917_v39 = vmul.f32 %v1896_v15, %v4613_v51  ;;  %v2142_v51 = vld [vmem:[#allocation7 + $0x10] sm:$0xff] }
 0xbca   :  { %v3484_v16 = vpop.f32.mrf.mxu1  ;;  %v2461_v15 = vld [vmem:[%s5137_s21 + $0x38] sm:$0xff] }
 0xbcb   :  { %v1920_v19 = vmul.f32 %v3484_v16, %v4605_v44  ;;  %v2138_v44 = vld [vmem:[#allocation6 + $0x20] sm:$0xff]  ;;  %v2460_v16 = vld [vmem:[%s5137_s21 + $0x30] sm:$0xff] }
 0xbcc   :  { %v1906_v20 = vpop.f32.mrf.mxu1  ;;  %3532 = vmatpush3.msra.mxu1 %v2138_v44 }
 0xbcd   :  { %v1919_v22 = vmul.f32 %v1906_v20, %v4607_v46  ;;  %3486 = vmatpush3.msra.mxu0 %v1920_v19  ;;  %3533 = vmatprep.subr.mxu1 %v3940_v0  ;;  %v2136_v46 = vld [vmem:[#allocation6 + $0x10] sm:$0xff]  ;;  %v2458_v20 = vld [vmem:[%s5137_s21 + $0x20] sm:$0xff] }
 0xbce   :  { %3487 = vmatprep.subr.mxu0 %v3940_v0  ;;  %3534 = vmatpush3.msra.mxu1 %v2137_v45  ;;  %v2459_v19 = vld [vmem:[%s5137_s21 + $0x28] sm:$0xff] }
 0xbcf   :  { %3488 = vmatpush3.msra.mxu0 %v1919_v22  ;;  %3535 = vmatprep.subr.mxu1 %v3940_v0  ;;  %v2457_v22 = vld [vmem:[%s5137_s21 + $0x18] sm:$0xff] }
 0xbd0   :  { %3489 = vmatprep.subr.mxu0 %v3940_v0  ;;  %3536 = vmatpush3.msra.mxu1 %v2136_v46 }
 0xbd1   :  { %3490 = vmatpush3.msra.mxu0 %v1918_v23  ;;  %3537 = vmatprep.subr.mxu1 %v3940_v0  ;;  %v2456_v23 = vld [vmem:[%s5137_s21 + $0x10] sm:$0xff] }
 0xbd2   :  { %3491 = vmatprep.subr.mxu0 %v3940_v0  ;;  %3538 = vmatpush3.msra.mxu1 %v2135_v47 }
 0xbd3   :  { %3492 = vmatpush3.msra.mxu0 %v1917_v39  ;;  %3539 = vmatprep.subr.mxu1 %v3940_v0  ;;  %v2455_v39 = vld [vmem:[%s5137_s21 + $0x8] sm:$0xff] }
 0xbd4   :  { %3493 = vmatprep.subr.mxu0 %v3940_v0  ;;  %3540 = vmatpush3.msra.mxu1 %v2134_v52 }
 0xbd5   :  { %3494 = vmatpush3.msra.mxu0 %v1916_v41  ;;  %3579 = vmatprep.subr.mxu1 %v3940_v0  ;;  %v2454_v41 = vld [vmem:[%s5137_s21] sm:$0xff] }
 0xbd6   :  { %3495 = vmatprep.subr.mxu0 %v3940_v0 }
 0xbd7   :  { %3496 = vmatpush3.msra.mxu0 %v1915_v42  ;;  %v1055_v42 = vadd.f32 1e-05, %v4516_v38 }
 0xbd8   :  { %3498 = vmatmul.mubr.msk.f32.vlgmr.msra.gmra.mxu0 %vm405_vm1, %v4595_v13  ;;  %3500 = vmatprep.subr.mxu0 %v3940_v0 }
 0xbd9   :  { %3504 = vmatprep.mubr.msk.f32.mxu0 %vm3941_vm3, %v3940_v0  ;;  %3709 = vrsqrt.f32 %v1055_v42  ;;  %v2639_v42 = vld [vmem:[%s5139_s23 + $0x80] sm:$0xff] }
 0xbe6   :  { %v3710_v46 = vpop.eup %3709 }
 0xbe7   :  { %v1059_v47 = vmul.f32 %v3710_v46, %v4510_v17  ;;  %v2968_v17 = vld [vmem:[%s5134_s18] ss:$0 sm:$0xff] }
 0xc98   :  { %v1990_v13 = vpop.f32.mrf.mxu0 }
 0xc99   :  { %3501 = vmatpush3.msra.mxu0 %v1990_v13 }
 0xc9a   :  { %v3499_v48 = vpop.f32.mrf.mxu0  ;;  %3502 = vmatprep.subr.mxu0 %v3940_v0 }
 0xc9b   :  { %3503 = vmatpush3.msra.mxu0 %v4670_v1 }
 0xc9c   :  { %3505 = vmatmul.mubr.msk.f32.vlgmr.msra.gmra.mxu0 %vm499_vm2, %v4234_v3  ;;  %3507 = vmatprep.subr.mxu0 %v3940_v0  ;;  %v2143_v3 = vld [vmem:[#allocation7 + $0x18] sm:$0xff] }
 0xc9d   :  { %3508 = vmatpush3.msra.mxu0 %v1990_v13  ;;  %3511 = vmatprep.mubr.msk.f32.mxu0 %vm3941_vm3, %v3940_v0  ;;  %v2917_v13 = vld [vmem:[%s5178_s29] ss:$0 sm:$0xff] }
 0xc9e   :  { %3509 = vmatprep.subr.mxu0 %v3940_v0 }
 0xc9f   :  { %3510 = vmatpush3.msra.mxu0 %v4670_v1  ;;  %v2472_v1 = vld [vmem:[%s5137_s21 + $0x90] sm:$0xff] }
 0xca0   :  { %3512 = vmatmul.mubr.msk.f32.vlgmr.msra.gmra.mxu0 %vm499_vm2, %v4236_v4  ;;  %3514 = vmatprep.subr.mxu0 %v3940_v0  ;;  %v2141_v4 = vld [vmem:[#allocation7 + $0x8] sm:$0xff] }
 0xca1   :  { %3515 = vmatpush3.msra.mxu0 %v2145_v49  ;;  %3526 = vmatprep.mubr.msk.f32.mxu0 %vm3941_vm3, %v3940_v0  ;;  %v2967_v49 = vld [vmem:[%s5133_s17] ss:$0 sm:$0xff] }
 0xca2   :  { %3516 = vmatprep.subr.mxu0 %v3940_v0 }
 0xca3   :  { %3517 = vmatpush3.msra.mxu0 %v2144_v50  ;;  %v1066_v50 = vmul.f32 %v2917_v13, %v1059_v47  ;;  %v2486_v47 = vld [vmem:[%s5138_s22] sm:$0x3] }
 0xca4   :  { %3518 = vmatprep.subr.mxu0 %v3940_v0 }
 0xca5   :  { %3519 = vmatpush3.msra.mxu0 %v2143_v3  ;;  %v2918_v3 = vld [vmem:[%s5179_s20] ss:$0 sm:$0xff] }
 0xca6   :  { %3520 = vmatprep.subr.mxu0 %v3940_v0  ;;  %v1073_v52 = vadd.f32 %v2918_v3, %v1066_v50 }
 0xca7   :  { %3521 = vmatpush3.msra.mxu0 %v2142_v51 }
 0xca8   :  { %3522 = vmatprep.subr.mxu0 %v3940_v0 }
 0xca9   :  { %3523 = vmatpush3.msra.mxu0 %v2141_v4 }
 0xcaa   :  { %3524 = vmatprep.subr.mxu0 %v3940_v0 }
 0xcab   :  { %3525 = vmatpush3.msra.mxu0 %v2140_v53 }
 0xcac   :  { %3544 = vmatprep.subr.mxu0 %v3940_v0 }
 0xd5c   :  { %v2060_v54 = vpop.f32.mrf.mxu0 }
 0xd5d   :  { %3542 = vmatmul.mubr.msk.f32.vlgmr.msra.gmra.mxu1 %vm405_vm1, %v2060_v54  ;;  %v4911_v54 = vld [vmem:[#allocation15 + $0x78] sm:$0xff] }
 0xd5e   :  { %v3506_v55 = vpop.f32.mrf.mxu0  ;;  %3580 = vmatpush3.msra.mxu1 %v4298_v18  ;;  %3611 = vmatprep.mubr.msk.f32.mxu1 %vm3941_vm3, %v3940_v0 }
 0xd5f   :  { %3581 = vmatprep.subr.mxu1 %v3940_v0  ;;  %v4917_v55 = vld [vmem:[#allocation15 + $0x70] sm:$0xff] }
 0xd60   :  { %v2130_v56 = vpop.f32.mrf.mxu0  ;;  %3582 = vmatpush3.msra.mxu1 %v4302_v21 }
 0xd61   :  { %3527 = vmatmul.mubr.msk.f32.vlgmr.msra.gmra.mxu0 %vm405_vm1, %v2130_v56  ;;  %3583 = vmatprep.subr.mxu1 %v3940_v0  ;;  %v4921_v56 = vld [vmem:[#allocation15 + $0x68] sm:$0xff] }
 0xd62   :  { %v3513_v57 = vpop.f32.mrf.mxu0  ;;  %3545 = vmatpush3.msra.mxu0 %v4298_v18  ;;  %3576 = vmatprep.mubr.msk.f32.mxu0 %vm3941_vm3, %v3940_v0 }
 0xd63   :  { %3546 = vmatprep.subr.mxu0 %v3940_v0  ;;  %3584 = vmatpush3.msra.mxu1 %v4308_v24  ;;  %v4925_v57 = vld [vmem:[#allocation15 + $0x60] sm:$0xff] }
 0xd64   :  { %3547 = vmatpush3.msra.mxu0 %v4302_v21  ;;  %3585 = vmatprep.subr.mxu1 %v3940_v0 }
 0xd65   :  { %3548 = vmatprep.subr.mxu0 %v3940_v0  ;;  %3586 = vmatpush3.msra.mxu1 %v4314_v25 }
 0xd66   :  { %3549 = vmatpush3.msra.mxu0 %v4308_v24  ;;  %3587 = vmatprep.subr.mxu1 %v3940_v0 }
 0xd67   :  { %3550 = vmatprep.subr.mxu0 %v3940_v0  ;;  %3588 = vmatpush3.msra.mxu1 %v4320_v26 }
 0xd68   :  { %3551 = vmatpush3.msra.mxu0 %v4314_v25  ;;  %3589 = vmatprep.subr.mxu1 %v3940_v0 }
 0xd69   :  { %3552 = vmatprep.subr.mxu0 %v3940_v0  ;;  %3590 = vmatpush3.msra.mxu1 %v4326_v27 }
 0xd6a   :  { %3553 = vmatpush3.msra.mxu0 %v4320_v26  ;;  %3591 = vmatprep.subr.mxu1 %v3940_v0 }
 0xd6b   :  { %3554 = vmatprep.subr.mxu0 %v3940_v0  ;;  %3592 = vmatpush3.msra.mxu1 %v4332_v28 }
 0xd6c   :  { %3555 = vmatpush3.msra.mxu0 %v4326_v27  ;;  %3593 = vmatprep.subr.mxu1 %v3940_v0 }
 0xd6d   :  { %3556 = vmatprep.subr.mxu0 %v3940_v0  ;;  %3594 = vmatpush3.msra.mxu1 %v4338_v29 }
 0xd6e   :  { %3557 = vmatpush3.msra.mxu0 %v4332_v28  ;;  %3595 = vmatprep.subr.mxu1 %v3940_v0  ;;  %v2485_v28 = vld [vmem:[%s5137_s21 + $0xf8] sm:$0xff] }
 0xd6f   :  { %3558 = vmatprep.subr.mxu0 %v3940_v0  ;;  %3596 = vmatpush3.msra.mxu1 %v4344_v30 }
 0xd70   :  { %3559 = vmatpush3.msra.mxu0 %v4338_v29  ;;  %3597 = vmatprep.subr.mxu1 %v3940_v0  ;;  %v2484_v29 = vld [vmem:[%s5137_s21 + $0xf0] sm:$0xff] }
 0xd71   :  { %3560 = vmatprep.subr.mxu0 %v3940_v0  ;;  %3598 = vmatpush3.msra.mxu1 %v4350_v31 }
 0xd72   :  { %3561 = vmatpush3.msra.mxu0 %v4344_v30  ;;  %3599 = vmatprep.subr.mxu1 %v3940_v0  ;;  %v2483_v30 = vld [vmem:[%s5137_s21 + $0xe8] sm:$0xff] }
 0xd73   :  { %3562 = vmatprep.subr.mxu0 %v3940_v0  ;;  %3600 = vmatpush3.msra.mxu1 %v4356_v32 }
 0xd74   :  { %3563 = vmatpush3.msra.mxu0 %v4350_v31  ;;  %3601 = vmatprep.subr.mxu1 %v3940_v0  ;;  %v2482_v31 = vld [vmem:[%s5137_s21 + $0xe0] sm:$0xff] }
 0xd75   :  { %3564 = vmatprep.subr.mxu0 %v3940_v0  ;;  %3602 = vmatpush3.msra.mxu1 %v4362_v33 }
 0xd76   :  { %3565 = vmatpush3.msra.mxu0 %v4356_v32  ;;  %3603 = vmatprep.subr.mxu1 %v3940_v0  ;;  %v2481_v32 = vld [vmem:[%s5137_s21 + $0xd8] sm:$0xff] }
 0xd77   :  { %3566 = vmatprep.subr.mxu0 %v3940_v0  ;;  %3604 = vmatpush3.msra.mxu1 %v4368_v34 }
 0xd78   :  { %3567 = vmatpush3.msra.mxu0 %v4362_v33  ;;  %3605 = vmatprep.subr.mxu1 %v3940_v0  ;;  %v2480_v33 = vld [vmem:[%s5137_s21 + $0xd0] sm:$0xff] }
 0xd79   :  { %3568 = vmatprep.subr.mxu0 %v3940_v0  ;;  %3606 = vmatpush3.msra.mxu1 %v4374_v35 }
 0xd7a   :  { %3569 = vmatpush3.msra.mxu0 %v4368_v34  ;;  %3607 = vmatprep.subr.mxu1 %v3940_v0  ;;  %v2479_v34 = vld [vmem:[%s5137_s21 + $0xc8] sm:$0xff] }
 0xd7b   :  { %3570 = vmatprep.subr.mxu0 %v3940_v0  ;;  %3608 = vmatpush3.msra.mxu1 %v4388_v36 }
 0xd7c   :  { %3571 = vmatpush3.msra.mxu0 %v4374_v35  ;;  %3609 = vmatprep.subr.mxu1 %v3940_v0 }
 0xd7d   :  { %3572 = vmatprep.subr.mxu0 %v3940_v0  ;;  %3610 = vmatpush3.msra.mxu1 %v4393_v37 }
 0xd7e   :  { %3573 = vmatpush3.msra.mxu0 %v4388_v36 }
 0xd7f   :  { %3574 = vmatprep.subr.mxu0 %v3940_v0 }
 0xd80   :  { %3575 = vmatpush3.msra.mxu0 %v4393_v37 }
 0xd81   :  { %2498 = vmatprep.subr.mxu0 %v2485_v28  ;;  %v4953_v28 = vld [vmem:[#allocation15 + $0x28] sm:$0xff] }
 0xe1d   :  { %v2288_v18 = vpop.f32.mrf.mxu1 }
 0xe1f   :  { %v3543_v21 = vpop.f32.mrf.mxu1 }
 0xe20   :  { %v4933_v21 = vld [vmem:[#allocation15 + $0x50] sm:$0xff] }
 0xe21   :  { %v2215_v24 = vpop.f32.mrf.mxu0 }
 0xe22   :  { %v2289_v25 = vadd.f32 %v2288_v18, %v2215_v24  ;;  %v4929_v18 = vld [vmem:[#allocation15 + $0x58] sm:$0xff]  ;;  %v4937_v24 = vld [vmem:[#allocation15 + $0x48] sm:$0xff] }
 0xe23   :  { %v3528_v26 = vpop.f32.mrf.mxu0 }
 0xe24   :  { %v2292_v27 = vadd.f32 %v2289_v25, %v4405_v40  ;;  %v4941_v25 = vld [vmem:[#allocation15 + $0x40] sm:$0xff]  ;;  %v4945_v26 = vld [vmem:[#allocation15 + $0x38] sm:$0xff] }
 0xe26   :  { %3577 = vmatmul.mubr.f32.vlgmr.msra.gmra.mxu0 %v2292_v27 }
 0xe27   :  { %2562 = vmatprep.mubr.f32.mxu0 %v3940_v0  ;;  %2499 = vmatpush1.msra.mxu0 %v2484_v29  ;;  %v4957_v29 = vld [vmem:[#allocation15 + $0x20] sm:$0xff] }
 0xe28   :  { %2500 = vmatprep.subr.mxu0 %v2483_v30  ;;  %v4961_v30 = vld [vmem:[#allocation15 + $0x18] sm:$0xff] }
 0xe29   :  { %2501 = vmatpush1.msra.mxu0 %v2482_v31  ;;  %v4965_v31 = vld [vmem:[#allocation15 + $0x10] sm:$0xff] }
 0xe2a   :  { %2502 = vmatprep.subr.mxu0 %v2481_v32  ;;  %v4969_v32 = vld [vmem:[#allocation15 + $0x8] sm:$0xff] }
 0xe2b   :  { %2503 = vmatpush1.msra.mxu0 %v2480_v33  ;;  %v4973_v33 = vld [vmem:[#allocation15] sm:$0xff] }
 0xe2c   :  { %2504 = vmatprep.subr.mxu0 %v2479_v34  ;;  %v2654_v34 = vld [vmem:[%s5139_s23 + $0xf8] sm:$0xff] }
 0xe2d   :  { %2505 = vmatpush1.msra.mxu0 %v2478_v58  ;;  %3166 = vmatprep.subr.mxu1 %v2654_v34  ;;  %v2636_v58 = vld [vmem:[%s5139_s23 + $0x68] sm:$0xff] }
 0xe2e   :  { %2506 = vmatprep.subr.mxu0 %v2477_v59  ;;  %v2651_v59 = vld [vmem:[%s5139_s23 + $0xe0] sm:$0xff] }
 0xe2f   :  { %2507 = vmatpush1.msra.mxu0 %v2476_v60  ;;  %v2635_v60 = vld [vmem:[%s5139_s23 + $0x60] sm:$0xff] }
 0xe30   :  { %2508 = vmatprep.subr.mxu0 %v2475_v61  ;;  %v2650_v61 = vld [vmem:[%s5139_s23 + $0xd8] sm:$0xff] }
 0xe31   :  { %2509 = vmatpush1.msra.mxu0 %v2474_v62  ;;  %v2634_v62 = vld [vmem:[%s5139_s23 + $0x58] sm:$0xff] }
 0xe32   :  { %2510 = vmatprep.subr.mxu0 %v2473_v63  ;;  %v2649_v63 = vld [vmem:[%s5139_s23 + $0xd0] sm:$0xff] }
 0xe33   :  { %2511 = vmatpush1.msra.mxu0 %v2472_v1  ;;  %v2633_v1 = vld [vmem:[%s5139_s23 + $0x50] sm:$0xff] }
 0xe34   :  { %2512 = vmatprep.subr.mxu0 %v2471_v2  ;;  %v2648_v2 = vld [vmem:[%s5139_s23 + $0xc8] sm:$0xff] }
 0xe35   :  { %2513 = vmatpush1.msra.mxu0 %v2470_v5  ;;  %v2632_v5 = vld [vmem:[%s5139_s23 + $0x48] sm:$0xff] }
 0xe36   :  { %2514 = vmatprep.subr.mxu0 %v2469_v6  ;;  %v2647_v6 = vld [vmem:[%s5139_s23 + $0xc0] sm:$0xff] }
 0xe37   :  { %2515 = vmatpush1.msra.mxu0 %v2468_v7  ;;  %v2631_v7 = vld [vmem:[%s5139_s23 + $0x40] sm:$0xff] }
 0xe38   :  { %2516 = vmatprep.subr.mxu0 %v2467_v8  ;;  %v2646_v8 = vld [vmem:[%s5139_s23 + $0xb8] sm:$0xff] }
 0xe39   :  { %2517 = vmatpush1.msra.mxu0 %v2466_v9  ;;  %v2630_v9 = vld [vmem:[%s5139_s23 + $0x38] sm:$0xff] }
 0xe3a   :  { %2518 = vmatprep.subr.mxu0 %v2465_v10  ;;  %v2645_v10 = vld [vmem:[%s5139_s23 + $0xb0] sm:$0xff] }
 0xe3b   :  { %2519 = vmatpush1.msra.mxu0 %v2464_v11  ;;  %v2629_v11 = vld [vmem:[%s5139_s23 + $0x30] sm:$0xff] }
 0xe3c   :  { %2520 = vmatprep.subr.mxu0 %v2463_v12  ;;  %v2644_v12 = vld [vmem:[%s5139_s23 + $0xa8] sm:$0xff] }
 0xe3d   :  { %2521 = vmatpush1.msra.mxu0 %v2462_v14  ;;  %v2628_v14 = vld [vmem:[%s5139_s23 + $0x28] sm:$0xff] }
 0xe3e   :  { %2522 = vmatprep.subr.mxu0 %v2461_v15  ;;  %v2643_v15 = vld [vmem:[%s5139_s23 + $0xa0] sm:$0xff] }
 0xe3f   :  { %2523 = vmatpush1.msra.mxu0 %v2460_v16  ;;  %v2627_v16 = vld [vmem:[%s5139_s23 + $0x20] sm:$0xff] }
 0xe40   :  { %2524 = vmatprep.subr.mxu0 %v2459_v19  ;;  %v2642_v19 = vld [vmem:[%s5139_s23 + $0x98] sm:$0xff] }
 0xe41   :  { %2525 = vmatpush1.msra.mxu0 %v2458_v20  ;;  %v2626_v20 = vld [vmem:[%s5139_s23 + $0x18] sm:$0xff] }
 0xe42   :  { %2526 = vmatprep.subr.mxu0 %v2457_v22  ;;  %v2641_v22 = vld [vmem:[%s5139_s23 + $0x90] sm:$0xff] }
 0xe43   :  { %2527 = vmatpush1.msra.mxu0 %v2456_v23  ;;  %v2625_v23 = vld [vmem:[%s5139_s23 + $0x10] sm:$0xff] }
 0xe44   :  { %2528 = vmatprep.subr.mxu0 %v2455_v39  ;;  %v2640_v39 = vld [vmem:[%s5139_s23 + $0x88] sm:$0xff] }
 0xe45   :  { %2529 = vmatpush1.msra.mxu0 %v2454_v41  ;;  %v2624_v41 = vld [vmem:[%s5139_s23 + $0x8] sm:$0xff] }
 0xe46   :  { %3614 = vmatprep.subr.mxu0 %v3940_v0 }
 0xee6   :  { %v2361_v35 = vpop.f32.mrf.mxu0 }
 0xee7   :  { %v4813_v36 = vsub.f32 %v2292_v27, %v2361_v35  ;;  %v4949_v27 = vld [vmem:[#allocation15 + $0x30] sm:$0xff] }
 0xee8   :  { %v3578_v37 = vpop.f32.mrf.mxu0  ;;  %v2638_v35 = vld [vmem:[%s5139_s23 + $0x78] sm:$0xff] }
 0xee9   :  { %v2366_v40 = vmul.f32 %v4813_v36, %v4813_v36  ;;  %v2637_v37 = vld [vmem:[%s5139_s23 + $0x70] sm:$0xff] }
 0xeeb   :  { %3612 = vmatmul.mubr.f32.vlgmr.msra.gmra.mxu1 %v2366_v40  ;;  %v2652_v40 = vld [vmem:[%s5139_s23 + $0xe8] sm:$0xff] }
 0xeec   :  { %3167 = vmatpush3.msra.mxu1 %v2638_v35 }
 0xfab   :  { %v2433_v43 = vpop.f32.mrf.mxu1 }
 0xfac   :  { %v2434_v44 = vadd.f32 1e-05, %v2433_v43  ;;  %v2623_v43 = vld [vmem:[%s5139_s23] sm:$0xff] }
 0xfad   :  { %v3613_v45 = vpop.f32.mrf.mxu1 }
 0xfae   :  { %3711 = vrsqrt.f32 %v2434_v44  ;;  %v2488_v44 = vlaneseq }
 0xfb0   :  { %v2489_v45 = vshrl.u32 %v2488_v44, 7 }
 0xfb2   :  { %v2490_v46 = vsub.s32 0, %v2489_v45  ;;  %v2494_v13 = vsub.s32 1, %v2489_v45 }
 0xfbb   :  { %v3712_v48 = vpop.eup %3711 }
 0xfbc   :  { %v2438_v38 = vmul.f32 %v3712_v48, %v4813_v36  ;;  %v2653_v36 = vld [vmem:[%s5139_s23 + $0xf0] sm:$0xff]  ;;  %v2491_v48 = vrot.slane %v2486_v47, %v2490_v46 }
 0xfbd   :  { %3168 = vmatprep.subr.mxu1 %v2653_v36 }
 0xfbe   :  { %v2445_v51 = vmul.f32 %v2967_v49, %v2438_v38  ;;  %3169 = vmatpush3.msra.mxu1 %v2637_v37  ;;  %v2495_v49 = vrot.slane %v2486_v47, %v2494_v13 }
 0xfbf   :  { %3170 = vmatprep.subr.mxu1 %v2652_v40 }
 0xfc0   :  { %v2452_v4 = vadd.f32 %v2968_v17, %v2445_v51  ;;  %3171 = vmatpush3.msra.mxu1 %v2636_v58 }
 0xfc1   :  { %3172 = vmatprep.subr.mxu1 %v2651_v59 }
 0xfc2   :  { %v4908_v53 = vadd.f32 %v2452_v4, %v1073_v52  ;;  %3173 = vmatpush3.msra.mxu1 %v2635_v60 }
 0xfc3   :  { %3174 = vmatprep.subr.mxu1 %v2650_v61 }
 0xfc4   :  { %2563 = vmatmul.mubr.f32.vlgmr.msra.gmra.mxu0 %v4908_v53  ;;  %3175 = vmatpush3.msra.mxu1 %v2634_v62 }
 0xfc5   :  { %3615 = vmatpush3.msra.mxu0 %v4911_v54  ;;  %3646 = vmatprep.mubr.msk.f32.mxu0 %vm3941_vm3, %v3940_v0 }
 0xfc6   :  { %3616 = vmatprep.subr.mxu0 %v3940_v0  ;;  %3176 = vmatprep.subr.mxu1 %v2649_v63 }
 0xfc7   :  { %3617 = vmatpush3.msra.mxu0 %v4917_v55  ;;  %3177 = vmatpush3.msra.mxu1 %v2633_v1 }
 0xfc8   :  { %3618 = vmatprep.subr.mxu0 %v3940_v0  ;;  %3178 = vmatprep.subr.mxu1 %v2648_v2 }
 0xfc9   :  { %3619 = vmatpush3.msra.mxu0 %v4921_v56  ;;  %3179 = vmatpush3.msra.mxu1 %v2632_v5 }
 0xfca   :  { %3620 = vmatprep.subr.mxu0 %v3940_v0  ;;  %3180 = vmatprep.subr.mxu1 %v2647_v6 }
 0xfcb   :  { %3621 = vmatpush3.msra.mxu0 %v4925_v57  ;;  %3181 = vmatpush3.msra.mxu1 %v2631_v7 }
 0xfcc   :  { %3622 = vmatprep.subr.mxu0 %v3940_v0  ;;  %3182 = vmatprep.subr.mxu1 %v2646_v8 }
 0xfcd   :  { %3623 = vmatpush3.msra.mxu0 %v4929_v18  ;;  %3183 = vmatpush3.msra.mxu1 %v2630_v9 }
 0xfce   :  { %3624 = vmatprep.subr.mxu0 %v3940_v0  ;;  %3184 = vmatprep.subr.mxu1 %v2645_v10 }
 0xfcf   :  { %3625 = vmatpush3.msra.mxu0 %v4933_v21  ;;  %3185 = vmatpush3.msra.mxu1 %v2629_v11 }
 0xfd0   :  { %3626 = vmatprep.subr.mxu0 %v3940_v0  ;;  %3186 = vmatprep.subr.mxu1 %v2644_v12 }
 0xfd1   :  { %3627 = vmatpush3.msra.mxu0 %v4937_v24  ;;  %3187 = vmatpush3.msra.mxu1 %v2628_v14 }
 0xfd2   :  { %3628 = vmatprep.subr.mxu0 %v3940_v0  ;;  %3188 = vmatprep.subr.mxu1 %v2643_v15 }
 0xfd3   :  { %3629 = vmatpush3.msra.mxu0 %v4941_v25  ;;  %3189 = vmatpush3.msra.mxu1 %v2627_v16 }
 0xfd4   :  { %3630 = vmatprep.subr.mxu0 %v3940_v0  ;;  %3190 = vmatprep.subr.mxu1 %v2642_v19 }
 0xfd5   :  { %3631 = vmatpush3.msra.mxu0 %v4945_v26  ;;  %3191 = vmatpush3.msra.mxu1 %v2626_v20 }
 0xfd6   :  { %3632 = vmatprep.subr.mxu0 %v3940_v0  ;;  %3192 = vmatprep.subr.mxu1 %v2641_v22 }
 0xfd7   :  { %3633 = vmatpush3.msra.mxu0 %v4949_v27  ;;  %3193 = vmatpush3.msra.mxu1 %v2625_v23 }
 0xfd8   :  { %3634 = vmatprep.subr.mxu0 %v3940_v0  ;;  %3194 = vmatprep.subr.mxu1 %v2640_v39 }
 0xfd9   :  { %3635 = vmatpush3.msra.mxu0 %v4953_v28  ;;  %3195 = vmatpush3.msra.mxu1 %v2624_v41 }
 0xfda   :  { %3636 = vmatprep.subr.mxu0 %v3940_v0  ;;  %3196 = vmatprep.subr.mxu1 %v2639_v42 }
 0xfdb   :  { %3637 = vmatpush3.msra.mxu0 %v4957_v29  ;;  %3197 = vmatpush3.msra.mxu1 %v2623_v43 }
 0xfdc   :  { %3638 = vmatprep.subr.mxu0 %v3940_v0  ;;  %3649 = vmatprep.subr.mxu1 %v3940_v0 }
 0xfdd   :  { %3639 = vmatpush3.msra.mxu0 %v4961_v30 }
 0xfde   :  { %3640 = vmatprep.subr.mxu0 %v3940_v0 }
 0xfdf   :  { %3641 = vmatpush3.msra.mxu0 %v4965_v31 }
 0xfe0   :  { %3642 = vmatprep.subr.mxu0 %v3940_v0 }
 0xfe1   :  { %3643 = vmatpush3.msra.mxu0 %v4969_v32 }
 0xfe2   :  { %3644 = vmatprep.subr.mxu0 %v3940_v0 }
 0xfe3   :  { %3645 = vmatpush3.msra.mxu0 %v4973_v33 }
0x1084   :  { %v2564_v50 = vpop.f32.mrf.mxu0 }
0x1085   :  { %v2565_v38 = vadd.f32 %v2564_v50, %v2491_v48 }
0x1086   :  { %v2566_v3 = vpop.f32.mrf.mxu0 }
0x1087   :  { %v2569_v17 = vmul.f32 0.70710677, %v2565_v38  ;;  %v2567_v51 = vadd.f32 %v2566_v3, %v2495_v49 }
0x1089   :  { %v2571_v52 = vand.u32 2147483647, %v2569_v17  ;;  %v2570_v4 = vmul.f32 0.70710677, %v2567_v51  ;;  %vm2611_vm6 = vcmp.ge.f32.partialorder %v2569_v17, 0.0 }
0x108b   :  { %v2573_v34 = vmul.f32 0.3275911, %v2571_v52  ;;  %v2572_v35 = vand.u32 2147483647, %v2570_v4  ;;  %v2599_v58 = vsub.f32 0.0, %v2571_v52  ;;  %vm2612_vm7 = vcmp.ge.f32.partialorder %v2570_v4, 0.0 }
0x108d   :  { %v2575_v36 = vadd.f32 1.0, %v2573_v34  ;;  %v2574_v37 = vmul.f32 0.3275911, %v2572_v35  ;;  %v2600_v59 = vsub.f32 0.0, %v2572_v35  ;;  %v2601_v60 = vmul.f32 %v2599_v58, %v2571_v52 }
0x108e   :  { %v2618_v34 = vmul.f32 0.5, %v2567_v51 }
0x108f   :  { %3713 = vrcp.f32 %v2575_v36  ;;  %v2576_v40 = vadd.f32 1.0, %v2574_v37  ;;  %v2602_v62 = vmul.f32 %v2600_v59, %v2572_v35  ;;  %v2603_v1 = vmul.f32 1.442695, %v2601_v60 }
0x1090   :  { %v2617_v36 = vmul.f32 0.5, %v2565_v38 }
0x1091   :  { %3715 = vrcp.f32 %v2576_v40  ;;  %v2605_v6 = vmul.f32 1.442695, %v2602_v62 }
0x1092   :  { %3717 = vpow2.f32 %v2603_v1 }
0x1093   :  { %3719 = vpow2.f32 %v2605_v6 }
0x109c   :  { %v3714_v61 = vpop.eup %3713 }
0x109d   :  { %v2581_v63 = vmul.f32 1.0614054, %v3714_v61 }
0x109e   :  { %v3716_v2 = vpop.eup %3715 }
0x109f   :  { %v2969_v5 = vadd.f32 -1.4531521, %v2581_v63  ;;  %v2582_v7 = vmul.f32 1.0614054, %v3716_v2  ;;  %v3718_v41 = vpop.eup %3717 }
0x10a0   :  { %v3720_v45 = vpop.eup %3719 }
0x10a1   :  { %v2585_v8 = vmul.f32 %v3714_v61, %v2969_v5  ;;  %v2970_v9 = vadd.f32 -1.4531521, %v2582_v7 }
0x10a3   :  { %v2587_v10 = vadd.f32 1.4214138, %v2585_v8  ;;  %v2586_v11 = vmul.f32 %v3716_v2, %v2970_v9 }
0x10a5   :  { %v2589_v12 = vmul.f32 %v3714_v61, %v2587_v10  ;;  %v2588_v14 = vadd.f32 1.4214138, %v2586_v11 }
0x10a7   :  { %v2971_v15 = vadd.f32 -0.28449672, %v2589_v12  ;;  %v2590_v16 = vmul.f32 %v3716_v2, %v2588_v14 }
0x10a9   :  { %v2593_v19 = vmul.f32 %v3714_v61, %v2971_v15  ;;  %v2972_v20 = vadd.f32 -0.28449672, %v2590_v16 }
0x10ab   :  { %v2595_v22 = vadd.f32 0.2548296, %v2593_v19  ;;  %v2594_v23 = vmul.f32 %v3716_v2, %v2972_v20 }
0x10ad   :  { %v2597_v39 = vmul.f32 %v3714_v61, %v2595_v22  ;;  %v2596_v42 = vadd.f32 0.2548296, %v2594_v23 }
0x10af   :  { %v2607_v43 = vmul.f32 %v3718_v41, %v2597_v39  ;;  %v2598_v44 = vmul.f32 %v3716_v2, %v2596_v42 }
0x10b1   :  { %v2609_v46 = vsub.f32 1.0, %v2607_v43  ;;  %v2608_v47 = vmul.f32 %v3720_v45, %v2598_v44 }
0x10b3   :  { %v2613_v13 = vsub.f32 0.0, %v2609_v46  ;;  %v2610_v48 = vsub.f32 1.0, %v2608_v47 }
0x10b5   :  { %v2615_v49 = vsel %vm2611_vm6, %v2609_v46, %v2613_v13  ;;  %v2614_v50 = vsub.f32 0.0, %v2610_v48 }
0x10b6   :  { %v2619_v3 = vadd.f32 1.0, %v2615_v49 }
0x10b7   :  { %v2616_v52 = vsel %vm2612_vm7, %v2610_v48, %v2614_v50 }
0x10b8   :  { %v2620_v35 = vadd.f32 1.0, %v2616_v52  ;;  %v2621_v40 = vmul.f32 %v2619_v3, %v2617_v36 }
0x10ba   :  { %v2622_v37 = vmul.f32 %v2620_v35, %v2618_v34 }
0x10bc   :  { %2726 = vmatprep.mubr.f32.mxu1 %v2622_v37 }
0x10bd   :  { %2727 = vmatmul.mubr.f32.vlgmr.msra.gmra.mxu1 %v2621_v40 }
0x10be   :  { %3650 = vmatpush3.msra.mxu1 %v4911_v54  ;;  %3681 = vmatprep.mubr.msk.f32.mxu1 %vm3941_vm3, %v3940_v0 }
0x10bf   :  { %3651 = vmatprep.subr.mxu1 %v3940_v0 }
0x10c0   :  { %3652 = vmatpush3.msra.mxu1 %v4917_v55  ;;  %v2973_v55 = vld [vmem:[%s5140_s24] ss:$0 sm:$0xff] }
0x10c1   :  { %3653 = vmatprep.subr.mxu1 %v3940_v0 }
0x10c2   :  { %3654 = vmatpush3.msra.mxu1 %v4921_v56 }
0x10c3   :  { %3655 = vmatprep.subr.mxu1 %v3940_v0 }
0x10c4   :  { %3656 = vmatpush3.msra.mxu1 %v4925_v57 }
0x10c5   :  { %3657 = vmatprep.subr.mxu1 %v3940_v0 }
0x10c6   :  { %3658 = vmatpush3.msra.mxu1 %v4929_v18 }
0x10c7   :  { %3659 = vmatprep.subr.mxu1 %v3940_v0 }
0x10c8   :  { %3660 = vmatpush3.msra.mxu1 %v4933_v21 }
0x10c9   :  { %3661 = vmatprep.subr.mxu1 %v3940_v0 }
0x10ca   :  { %3662 = vmatpush3.msra.mxu1 %v4937_v24 }
0x10cb   :  { %3663 = vmatprep.subr.mxu1 %v3940_v0 }
0x10cc   :  { %3664 = vmatpush3.msra.mxu1 %v4941_v25 }
0x10cd   :  { %3665 = vmatprep.subr.mxu1 %v3940_v0 }
0x10ce   :  { %3666 = vmatpush3.msra.mxu1 %v4945_v26 }
0x10cf   :  { %3667 = vmatprep.subr.mxu1 %v3940_v0 }
0x10d0   :  { %3668 = vmatpush3.msra.mxu1 %v4949_v27 }
0x10d1   :  { %3669 = vmatprep.subr.mxu1 %v3940_v0 }
0x10d2   :  { %3670 = vmatpush3.msra.mxu1 %v4953_v28 }
0x10d3   :  { %3671 = vmatprep.subr.mxu1 %v3940_v0 }
0x10d4   :  { %3672 = vmatpush3.msra.mxu1 %v4957_v29 }
0x10d5   :  { %3673 = vmatprep.subr.mxu1 %v3940_v0 }
0x10d6   :  { %3674 = vmatpush3.msra.mxu1 %v4961_v30 }
0x10d7   :  { %3675 = vmatprep.subr.mxu1 %v3940_v0 }
0x10d8   :  { %3676 = vmatpush3.msra.mxu1 %v4965_v31  ;;  %v2974_v31 = vld [vmem:[#allocation12] ss:$0 sm:$0xff] }
0x10d9   :  { %3677 = vmatprep.subr.mxu1 %v3940_v0 }
0x10da   :  { %3678 = vmatpush3.msra.mxu1 %v4969_v32 }
0x10db   :  { %3679 = vmatprep.subr.mxu1 %v3940_v0 }
0x10dc   :  { %3680 = vmatpush3.msra.mxu1 %v4973_v33  ;;  %v2975_v33 = vld [vmem:[#allocation13] ss:$0 sm:$0xff] }
0x117d   :  { %v3198_v54 = vpop.f32.mrf.mxu1 }
0x117f   :  { %v3199_v56 = vpop.f32.mrf.mxu1 }
0x1180   :  { %v3200_v57 = vadd.f32 %v3199_v56, %v3198_v54 }
0x1182   :  { %v2729_v18 = vadd.f32 %v3200_v57, %v2973_v55 }
0x1184   :  { %v2732_v21 = vadd.f32 %v2729_v18, %v4908_v53 }
0x1186   :  { %3647 = vmatmul.mubr.f32.vlgmr.msra.gmra.mxu0 %v2732_v21 }
0x1246   :  { %v2801_v24 = vpop.f32.mrf.mxu0 }
0x1247   :  { %v2805_v25 = vsub.f32 %v2732_v21, %v2801_v24 }
0x1248   :  { %v3648_v26 = vpop.f32.mrf.mxu0 }
0x1249   :  { %v2806_v27 = vmul.f32 %v2805_v25, %v2805_v25 }
0x124b   :  { %3682 = vmatmul.mubr.f32.vlgmr.msra.gmra.mxu1 %v2806_v27 }
0x130b   :  { %v2873_v28 = vpop.f32.mrf.mxu1 }
0x130c   :  { %v2874_v0 = vadd.f32 1e-05, %v2873_v28 }
0x130d   :  { %v3683_v29 = vpop.f32.mrf.mxu1 }
0x130e   :  { %3721 = vrsqrt.f32 %v2874_v0 }
0x131b   :  { %v3722_v30 = vpop.eup %3721 }
0x131c   :  { %v2878_v32 = vmul.f32 %v3722_v30, %v2805_v25 }
0x131e   :  { %v2885_v38 = vmul.f32 %v2974_v31, %v2878_v32 }
0x1320   :  { %v2892_v17 = vadd.f32 %v2975_v33, %v2885_v38 }
0x1322   :  { %2893 = vst [vmem:[%s5144_s28] sm:$0xff] %v2892_v17 }
0x1323   :  { %2898 = vsyncpa [#allocation3], 1 }
0x1324   :  { %2899 = vsyncpa [#allocation5], 1 }
0x1325   :  { %2900 = vsyncpa [#allocation8], 1 }
0x1326   :  { %2901 = vsyncpa [#allocation11], 1 }
0x1327   :  { %2902 = vsyncpa [#allocation14], 1 }

</bundles_post_ra>
